<compile_context>
chip_gen: v7x
topology: tpu7x:2x2x1
jax: 0.10.0
libtpu: 0.0.40
codegen_flags: <defaults>
</compile_context>

<pallas_src>
import math

import jax
import jax.numpy as jnp
from jax.experimental import pallas as pl
from jax.experimental.pallas import tpu as pltpu

D_MODEL = 32
N_HEAD = 4
D_HEAD = D_MODEL // N_HEAD
D_FF = 64
N_LAYERS = 2
LN_EPS = 1e-5          # PyTorch TransformerEncoderLayer layer_norm_eps default
SEQ_LEN = 8
BATCH = 2


# ---------------------------------------------------------------------------
# Shared math helpers (used by kernel and reference)
# ---------------------------------------------------------------------------
def _dot(a, b):
    return jnp.dot(a, b, preferred_element_type=jnp.float32)


def _layernorm(x, g, b):
    mean = jnp.mean(x, axis=-1, keepdims=True)
    var = jnp.mean((x - mean) ** 2, axis=-1, keepdims=True)
    return (x - mean) * jax.lax.rsqrt(var + LN_EPS) * g + b


# ---------------------------------------------------------------------------
# Fused Pallas kernel: 2 encoder layers + regression head
# ---------------------------------------------------------------------------
def fused_forward_kernel(x_ref, w_attn_ref, w_ffn_ref, vec_ref,
                         w_head_ref, b_head_ref, o_ref, heads_ref):
    """x_ref: [S, D] (batch 0 only). All weights resident in VMEM.

    w_attn_ref: [L*4, D, D]   Wq, Wk, Wv, Wo per layer, (in, out) layout
    w_ffn_ref:  [L*2, D, D_FF] W1 as (in, out); W2 stored as (out, in)
    vec_ref:    [L, 10, D_FF]  biases + LN params, padded to 64 lanes
    w_head_ref: [4, D, D]      head weights zero-padded to [D, D]
    b_head_ref: [4, 1, D]      head biases zero-padded to D lanes
    heads_ref:  [S, D] VMEM scratch for concatenated per-head outputs
    """
    x = x_ref[...]                                     # [S, D] f32
    scale = 1.0 / math.sqrt(D_HEAD)

    for l in range(N_LAYERS):                          # static unroll (2 layers)
        wq = w_attn_ref[4 * l + 0]
        wk = w_attn_ref[4 * l + 1]
        wv = w_attn_ref[4 * l + 2]
        wo = w_attn_ref[4 * l + 3]
        w1 = w_ffn_ref[2 * l + 0]                      # [D, D_FF] (in, out)
        w2t = w_ffn_ref[2 * l + 1]                     # [D, D_FF] (out, in)
        vec = vec_ref[l]                               # [10, 64]
        bq = vec[0:1, :D_MODEL]
        bk = vec[1:2, :D_MODEL]
        bv = vec[2:3, :D_MODEL]
        bo = vec[3:4, :D_MODEL]
        ln1g = vec[4:5, :D_MODEL]
        ln1b = vec[5:6, :D_MODEL]
        b1 = vec[6:7, :D_FF]
        b2 = vec[7:8, :D_MODEL]
        ln2g = vec[8:9, :D_MODEL]
        ln2b = vec[9:10, :D_MODEL]

        # --- multi-head self attention (lane-0-aligned q/k/v) ---------------
        q = _dot(x, wq) + bq
        k = _dot(x, wk) + bk
        v = _dot(x, wv) + bv

        for h in range(N_HEAD):                        # static unroll (4 heads)
            sl = slice(h * D_HEAD, (h + 1) * D_HEAD)
            qh, kh, vh = q[:, sl], k[:, sl], v[:, sl]
            s = jax.lax.dot_general(qh, kh, (((1,), (1,)), ((), ())),
                                    preferred_element_type=jnp.float32) * scale
            s = s - jnp.max(s, axis=-1, keepdims=True)
            p = jnp.exp(s)
            p = p * pl.reciprocal(jnp.sum(p, axis=-1, keepdims=True), approx=True)
            heads_ref[:, sl] = _dot(p, vh)             # assemble heads in scratch

        attn = _dot(heads_ref[...], wo) + bo           # single output projection
        x = _layernorm(x + attn, ln1g, ln1b)

        # --- feed-forward ----------------------------------------------------
        h1 = jnp.maximum(_dot(x, w1) + b1, 0.0)
        ff = jax.lax.dot_general(h1, w2t, (((1,), (1,)), ((), ())),
                                 preferred_element_type=jnp.float32) + b2
        x = _layernorm(x + ff, ln2g, ln2b)

    # --- regression head: 3x (Linear+ReLU) + Linear, zero-padded to [D, D] ---
    for i in range(3):
        x = jnp.maximum(_dot(x, w_head_ref[i]) + b_head_ref[i], 0.0)
    o_ref[...] = _dot(x, w_head_ref[3]) + b_head_ref[3]   # col 0 = prediction


# ---------------------------------------------------------------------------
# Wrapper (single pallas_call launch)
# ---------------------------------------------------------------------------
def _full_spec(shape):
    nd = len(shape)
    return pl.BlockSpec(shape, lambda i, nd=nd: (0,) * nd)


def transformer_regressor_forward(src_sbd, packed):
    """src: [seq_len, batch, d_model] -> [seq_len, 1, 1] (matches PyTorch)."""
    # Only batch 0 feeds the regression head (output[:, 0:1, :]) and the
    # encoder never mixes batch elements -> drop dead batches (bit-identical).
    x0 = src_sbd[:, 0, :]                              # [S, D]
    args = (x0, packed["w_attn"], packed["w_ffn"], packed["vec"],
            packed["w_head"], packed["b_head"])
    y = pl.pallas_call(
        fused_forward_kernel,
        out_shape=jax.ShapeDtypeStruct((SEQ_LEN, D_MODEL), jnp.float32),
        grid=(1,),
        in_specs=[_full_spec(a.shape) for a in args],
        out_specs=pl.BlockSpec((SEQ_LEN, D_MODEL), lambda i: (0, 0)),
        scratch_shapes=[pltpu.VMEM((SEQ_LEN, D_MODEL), jnp.float32)],
    )(*args)
    return y[:, 0:1][:, :, None]                       # [S, 1, 1]


# ---------------------------------------------------------------------------
# Deterministic synthetic parameters (raw) + packing for the kernel
# ---------------------------------------------------------------------------
def init_params(key):
    def linear(k, in_dim, out_dim):
        kw, kb = jax.random.split(k)
        # PyTorch nn.Linear stores W as [out, in]; y = x @ W.T + b.
        w = jax.random.normal(kw, (out_dim, in_dim), jnp.float32) / math.sqrt(in_dim)
        b = jax.random.normal(kb, (out_dim,), jnp.float32) * 0.01
        return w.T, b                                  # ([in, out], [out])

    keys = iter(jax.random.split(key, 6 * N_LAYERS + 4))
    layers = []
    for _ in range(N_LAYERS):
        wq, bq = linear(next(keys), D_MODEL, D_MODEL)
        wk, bk = linear(next(keys), D_MODEL, D_MODEL)
        wv, bv = linear(next(keys), D_MODEL, D_MODEL)
        wo, bo = linear(next(keys), D_MODEL, D_MODEL)
        w1, b1 = linear(next(keys), D_MODEL, D_FF)
        w2, b2 = linear(next(keys), D_FF, D_MODEL)
        layers.append(dict(
            wq=wq, bq=bq, wk=wk, bk=bk, wv=wv, bv=bv, wo=wo, bo=bo,
            ln1g=jnp.ones((D_MODEL,), jnp.float32),
            ln1b=jnp.zeros((D_MODEL,), jnp.float32),
            w1=w1, b1=b1, w2=w2, b2=b2,
            ln2g=jnp.ones((D_MODEL,), jnp.float32),
            ln2b=jnp.zeros((D_MODEL,), jnp.float32)))
    hw1, hb1 = linear(next(keys), D_MODEL, D_MODEL // 2)
    hw2, hb2 = linear(next(keys), D_MODEL // 2, D_MODEL // 4)
    hw3, hb3 = linear(next(keys), D_MODEL // 4, D_MODEL // 8)
    hw4, hb4 = linear(next(keys), D_MODEL // 8, 1)
    head = dict(w1=hw1, b1=hb1, w2=hw2, b2=hb2, w3=hw3, b3=hb3, w4=hw4, b4=hb4)
    return dict(layers=layers, head=head)


def pack_params(raw):
    def pad_vec(v, width):
        return jnp.pad(v, (0, width - v.shape[0]))

    def pad_mat(w, rows, cols):
        return jnp.pad(w, ((0, rows - w.shape[0]), (0, cols - w.shape[1])))

    w_attn, w_ffn, vec = [], [], []
    for lp in raw["layers"]:
        w_attn += [lp["wq"], lp["wk"], lp["wv"], lp["wo"]]
        w_ffn += [lp["w1"], lp["w2"].T]                # W2 stored as (out, in)
        vec.append(jnp.stack([
            pad_vec(lp["bq"], D_FF), pad_vec(lp["bk"], D_FF),
            pad_vec(lp["bv"], D_FF), pad_vec(lp["bo"], D_FF),
            pad_vec(lp["ln1g"], D_FF), pad_vec(lp["ln1b"], D_FF),
            lp["b1"],
            pad_vec(lp["b2"], D_FF),
            pad_vec(lp["ln2g"], D_FF), pad_vec(lp["ln2b"], D_FF)]))
    hp = raw["head"]
    w_head = jnp.stack([pad_mat(hp[f"w{i}"], D_MODEL, D_MODEL) for i in (1, 2, 3, 4)])
    b_head = jnp.stack([pad_vec(hp[f"b{i}"], D_MODEL) for i in (1, 2, 3, 4)])[:, None, :]
    return dict(w_attn=jnp.stack(w_attn),              # [2*4, 32, 32]
                w_ffn=jnp.stack(w_ffn),                # [2*2, 32, 64]
                vec=jnp.stack(vec),                    # [2, 10, 64]
                w_head=w_head,                         # [4, 32, 32]
                b_head=b_head)                         # [4, 1, 32]


# ---------------------------------------------------------------------------
# Pure-JAX reference (exact math, full batch — verifies dead-batch elimination)
# ---------------------------------------------------------------------------
def reference_forward(src_sbd, raw):
    x = jnp.transpose(src_sbd, (1, 0, 2))              # [B, S, D]
    B, S, D = x.shape
    for lp in raw["layers"]:
        q = x @ lp["wq"] + lp["bq"]
        k = x @ lp["wk"] + lp["bk"]
        v = x @ lp["wv"] + lp["bv"]

        def heads(t):
            return t.reshape(B, S, N_HEAD, D_HEAD).transpose(0, 2, 1, 3)

        qh, kh, vh = heads(q), heads(k), heads(v)
        s = jnp.einsum("bhqd,bhkd->bhqk", qh, kh) / math.sqrt(D_HEAD)
        p = jax.nn.softmax(s, axis=-1)
        o = jnp.einsum("bhqk,bhkd->bhqd", p, vh).transpose(0, 2, 1, 3).reshape(B, S, D)
        attn = o @ lp["wo"] + lp["bo"]
        x = _layernorm(x + attn, lp["ln1g"], lp["ln1b"])
        ff = jnp.maximum(x @ lp["w1"] + lp["b1"], 0.0) @ lp["w2"] + lp["b2"]
        x = _layernorm(x + ff, lp["ln2g"], lp["ln2b"])
    x0 = x[0]                                          # PyTorch output[:, 0:1, :]
    hp = raw["head"]
    y = jnp.maximum(x0 @ hp["w1"] + hp["b1"], 0.0)
    y = jnp.maximum(y @ hp["w2"] + hp["b2"], 0.0)
    y = jnp.maximum(y @ hp["w3"] + hp["b3"], 0.0)
    y = y @ hp["w4"] + hp["b4"]
    return y[:, :, None]                               # [S, 1, 1]


if __name__ == "__main__":
    key = jax.random.PRNGKey(0)
    k_src, k_par = jax.random.split(key)
    src = jax.random.normal(k_src, (SEQ_LEN, BATCH, D_MODEL), jnp.float32)
    raw = init_params(k_par)
    packed = pack_params(raw)

    out = transformer_regressor_forward(src, packed)
    out = jax.block_until_ready(out)

    ref = reference_forward(src, raw)
    assert out.shape == (SEQ_LEN, 1, 1), out.shape
    # Tolerance slightly relaxed vs exact math because softmax normalization
    # uses the EUP approximate reciprocal (pl.reciprocal(..., approx=True)).
    assert jnp.allclose(out, ref, atol=2e-3, rtol=2e-3), "Pallas output != reference"

    print("KERNEL_OK")
</pallas_src>

<mosaic_0001>
module attributes {stable_mosaic.version = 11 : i64} {
  func.func @fused_forward_kernel(%arg0: i32, %arg1: memref<8x32xf32, #tpu.memory_space<vmem>>, %arg2: memref<8x32x32xf32, #tpu.memory_space<vmem>>, %arg3: memref<4x32x64xf32, #tpu.memory_space<vmem>>, %arg4: memref<2x10x64xf32, #tpu.memory_space<vmem>>, %arg5: memref<4x32x32xf32, #tpu.memory_space<vmem>>, %arg6: memref<4x1x32xf32, #tpu.memory_space<vmem>>, %arg7: memref<8x32xf32, #tpu.memory_space<vmem>>, %arg8: memref<8x32xf32, #tpu.memory_space<vmem>>) attributes {dimension_semantics = [#tpu.dimension_semantics<arbitrary>], iteration_bounds = array<i64: 1>, scalar_prefetch = 0 : i64, scratch_operands = 1 : i64, tpu.core_type = #tpu.core_type<tc>, window_params = [{pipeline_mode = #tpu.pipeline_mode<synchronous>, transform_indices = @transform_0, window_bounds = array<i64: 8, 32>}, {pipeline_mode = #tpu.pipeline_mode<synchronous>, transform_indices = @transform_1, window_bounds = array<i64: 8, 32, 32>}, {pipeline_mode = #tpu.pipeline_mode<synchronous>, transform_indices = @transform_2, window_bounds = array<i64: 4, 32, 64>}, {pipeline_mode = #tpu.pipeline_mode<synchronous>, transform_indices = @transform_3, window_bounds = array<i64: 2, 10, 64>}, {pipeline_mode = #tpu.pipeline_mode<synchronous>, transform_indices = @transform_4, window_bounds = array<i64: 4, 32, 32>}, {pipeline_mode = #tpu.pipeline_mode<synchronous>, transform_indices = @transform_5, window_bounds = array<i64: 4, 1, 32>}, {pipeline_mode = #tpu.pipeline_mode<synchronous>, transform_indices = @transform_6, window_bounds = array<i64: 8, 32>}]} {
    %c0 = arith.constant 0 : index
    %c0_0 = arith.constant 0 : index
    %0 = vector.load %arg1[%c0, %c0_0] : memref<8x32xf32, #tpu.memory_space<vmem>>, vector<8x32xf32>
    %c0_1 = arith.constant 0 : index
    %c0_2 = arith.constant 0 : index
    %c0_3 = arith.constant 0 : index
    %1 = vector.load %arg2[%c0_1, %c0_2, %c0_3] : memref<8x32x32xf32, #tpu.memory_space<vmem>>, vector<1x32x32xf32>
    %2 = vector.shape_cast %1 : vector<1x32x32xf32> to vector<32x32xf32>
    %c1 = arith.constant 1 : index
    %c0_4 = arith.constant 0 : index
    %c0_5 = arith.constant 0 : index
    %3 = vector.load %arg2[%c1, %c0_4, %c0_5] : memref<8x32x32xf32, #tpu.memory_space<vmem>>, vector<1x32x32xf32>
    %4 = vector.shape_cast %3 : vector<1x32x32xf32> to vector<32x32xf32>
    %c2 = arith.constant 2 : index
    %c0_6 = arith.constant 0 : index
    %c0_7 = arith.constant 0 : index
    %5 = vector.load %arg2[%c2, %c0_6, %c0_7] : memref<8x32x32xf32, #tpu.memory_space<vmem>>, vector<1x32x32xf32>
    %6 = vector.shape_cast %5 : vector<1x32x32xf32> to vector<32x32xf32>
    %c3 = arith.constant 3 : index
    %c0_8 = arith.constant 0 : index
    %c0_9 = arith.constant 0 : index
    %7 = vector.load %arg2[%c3, %c0_8, %c0_9] : memref<8x32x32xf32, #tpu.memory_space<vmem>>, vector<1x32x32xf32>
    %8 = vector.shape_cast %7 : vector<1x32x32xf32> to vector<32x32xf32>
    %c0_10 = arith.constant 0 : index
    %c0_11 = arith.constant 0 : index
    %c0_12 = arith.constant 0 : index
    %9 = vector.load %arg3[%c0_10, %c0_11, %c0_12] : memref<4x32x64xf32, #tpu.memory_space<vmem>>, vector<1x32x64xf32>
    %10 = vector.shape_cast %9 : vector<1x32x64xf32> to vector<32x64xf32>
    %c1_13 = arith.constant 1 : index
    %c0_14 = arith.constant 0 : index
    %c0_15 = arith.constant 0 : index
    %11 = vector.load %arg3[%c1_13, %c0_14, %c0_15] : memref<4x32x64xf32, #tpu.memory_space<vmem>>, vector<1x32x64xf32>
    %12 = vector.shape_cast %11 : vector<1x32x64xf32> to vector<32x64xf32>
    %c0_16 = arith.constant 0 : index
    %c0_17 = arith.constant 0 : index
    %c0_18 = arith.constant 0 : index
    %13 = vector.load %arg4[%c0_16, %c0_17, %c0_18] : memref<2x10x64xf32, #tpu.memory_space<vmem>>, vector<1x10x64xf32>
    %14 = vector.shape_cast %13 : vector<1x10x64xf32> to vector<10x64xf32>
    %15 = vector.extract_strided_slice %14 {offsets = [0, 0], sizes = [1, 32], strides = [1, 1]} : vector<10x64xf32> to vector<1x32xf32>
    %16 = vector.extract_strided_slice %14 {offsets = [1, 0], sizes = [1, 32], strides = [1, 1]} : vector<10x64xf32> to vector<1x32xf32>
    %17 = vector.extract_strided_slice %14 {offsets = [2, 0], sizes = [1, 32], strides = [1, 1]} : vector<10x64xf32> to vector<1x32xf32>
    %18 = vector.extract_strided_slice %14 {offsets = [3, 0], sizes = [1, 32], strides = [1, 1]} : vector<10x64xf32> to vector<1x32xf32>
    %19 = vector.extract_strided_slice %14 {offsets = [4, 0], sizes = [1, 32], strides = [1, 1]} : vector<10x64xf32> to vector<1x32xf32>
    %20 = vector.extract_strided_slice %14 {offsets = [5, 0], sizes = [1, 32], strides = [1, 1]} : vector<10x64xf32> to vector<1x32xf32>
    %21 = vector.extract_strided_slice %14 {offsets = [6, 0], sizes = [1, 64], strides = [1, 1]} : vector<10x64xf32> to vector<1x64xf32>
    %22 = vector.extract_strided_slice %14 {offsets = [7, 0], sizes = [1, 32], strides = [1, 1]} : vector<10x64xf32> to vector<1x32xf32>
    %23 = vector.extract_strided_slice %14 {offsets = [8, 0], sizes = [1, 32], strides = [1, 1]} : vector<10x64xf32> to vector<1x32xf32>
    %24 = vector.extract_strided_slice %14 {offsets = [9, 0], sizes = [1, 32], strides = [1, 1]} : vector<10x64xf32> to vector<1x32xf32>
    %cst = arith.constant dense<0.000000e+00> : vector<8x32xf32>
    %25 = tpu.matmul %0, %2, %cst {dimension_numbers = #tpu.dot_dimension_numbers<[1], [0], [0], [1], [0, 0, 1, 1], [], []>} : vector<8x32xf32>, vector<32x32xf32>, vector<8x32xf32> -> vector<8x32xf32>
    %26 = vector.broadcast %15 : vector<1x32xf32> to vector<8x32xf32>
    %27 = arith.addf %25, %26 : vector<8x32xf32>
    %cst_19 = arith.constant dense<0.000000e+00> : vector<8x32xf32>
    %28 = tpu.matmul %0, %4, %cst_19 {dimension_numbers = #tpu.dot_dimension_numbers<[1], [0], [0], [1], [0, 0, 1, 1], [], []>} : vector<8x32xf32>, vector<32x32xf32>, vector<8x32xf32> -> vector<8x32xf32>
    %29 = vector.broadcast %16 : vector<1x32xf32> to vector<8x32xf32>
    %30 = arith.addf %28, %29 : vector<8x32xf32>
    %cst_20 = arith.constant dense<0.000000e+00> : vector<8x32xf32>
    %31 = tpu.matmul %0, %6, %cst_20 {dimension_numbers = #tpu.dot_dimension_numbers<[1], [0], [0], [1], [0, 0, 1, 1], [], []>} : vector<8x32xf32>, vector<32x32xf32>, vector<8x32xf32> -> vector<8x32xf32>
    %32 = vector.broadcast %17 : vector<1x32xf32> to vector<8x32xf32>
    %33 = arith.addf %31, %32 : vector<8x32xf32>
    %34 = vector.extract_strided_slice %27 {offsets = [0, 0], sizes = [8, 8], strides = [1, 1]} : vector<8x32xf32> to vector<8x8xf32>
    %35 = vector.extract_strided_slice %30 {offsets = [0, 0], sizes = [8, 8], strides = [1, 1]} : vector<8x32xf32> to vector<8x8xf32>
    %36 = vector.extract_strided_slice %33 {offsets = [0, 0], sizes = [8, 8], strides = [1, 1]} : vector<8x32xf32> to vector<8x8xf32>
    %cst_21 = arith.constant dense<0.000000e+00> : vector<8x8xf32>
    %37 = tpu.matmul %34, %35, %cst_21 {dimension_numbers = #tpu.dot_dimension_numbers<[1], [1], [0], [0], [0, 0, 1, 0], [], []>} : vector<8x8xf32>, vector<8x8xf32>, vector<8x8xf32> -> vector<8x8xf32>
    %cst_22 = arith.constant 0.353553385 : f32
    %38 = vector.broadcast %cst_22 : f32 to vector<8x8xf32>
    %39 = arith.mulf %37, %38 : vector<8x8xf32>
    %cst_23 = arith.constant dense<0xFF800000> : vector<8xf32>
    %40 = vector.multi_reduction <maximumf>, %39, %cst_23 [1] : vector<8x8xf32> to vector<8xf32>
    %41 = vector.shape_cast %40 : vector<8xf32> to vector<8x1xf32>
    %42 = vector.broadcast %41 : vector<8x1xf32> to vector<8x8xf32>
    %43 = arith.subf %39, %42 : vector<8x8xf32>
    %44 = math.exp %43 : vector<8x8xf32>
    %cst_24 = arith.constant dense<0.000000e+00> : vector<8xf32>
    %45 = vector.multi_reduction <add>, %44, %cst_24 [1] : vector<8x8xf32> to vector<8xf32>
    %46 = vector.shape_cast %45 : vector<8xf32> to vector<8x1xf32>
    %47 = tpu.reciprocal %46 {approx = true} : vector<8x1xf32> -> vector<8x1xf32>
    %48 = vector.broadcast %47 : vector<8x1xf32> to vector<8x8xf32>
    %49 = arith.mulf %44, %48 : vector<8x8xf32>
    %cst_25 = arith.constant dense<0.000000e+00> : vector<8x8xf32>
    %50 = tpu.matmul %49, %36, %cst_25 {dimension_numbers = #tpu.dot_dimension_numbers<[1], [0], [0], [1], [0, 0, 1, 1], [], []>} : vector<8x8xf32>, vector<8x8xf32>, vector<8x8xf32> -> vector<8x8xf32>
    %c0_26 = arith.constant 0 : index
    %c0_27 = arith.constant 0 : index
    %51 = vector.load %arg8[%c0_26, %c0_27] : memref<8x32xf32, #tpu.memory_space<vmem>>, vector<8x8xf32>
    tpu.vector_store %arg8[%c0_26, %c0_27], %50 {strides = array<i32>} : memref<8x32xf32, #tpu.memory_space<vmem>>, vector<8x8xf32>,
    %52 = vector.extract_strided_slice %27 {offsets = [0, 8], sizes = [8, 8], strides = [1, 1]} : vector<8x32xf32> to vector<8x8xf32>
    %53 = vector.extract_strided_slice %30 {offsets = [0, 8], sizes = [8, 8], strides = [1, 1]} : vector<8x32xf32> to vector<8x8xf32>
    %54 = vector.extract_strided_slice %33 {offsets = [0, 8], sizes = [8, 8], strides = [1, 1]} : vector<8x32xf32> to vector<8x8xf32>
    %cst_28 = arith.constant dense<0.000000e+00> : vector<8x8xf32>
    %55 = tpu.matmul %52, %53, %cst_28 {dimension_numbers = #tpu.dot_dimension_numbers<[1], [1], [0], [0], [0, 0, 1, 0], [], []>} : vector<8x8xf32>, vector<8x8xf32>, vector<8x8xf32> -> vector<8x8xf32>
    %cst_29 = arith.constant 0.353553385 : f32
    %56 = vector.broadcast %cst_29 : f32 to vector<8x8xf32>
    %57 = arith.mulf %55, %56 : vector<8x8xf32>
    %cst_30 = arith.constant dense<0xFF800000> : vector<8xf32>
    %58 = vector.multi_reduction <maximumf>, %57, %cst_30 [1] : vector<8x8xf32> to vector<8xf32>
    %59 = vector.shape_cast %58 : vector<8xf32> to vector<8x1xf32>
    %60 = vector.broadcast %59 : vector<8x1xf32> to vector<8x8xf32>
    %61 = arith.subf %57, %60 : vector<8x8xf32>
    %62 = math.exp %61 : vector<8x8xf32>
    %cst_31 = arith.constant dense<0.000000e+00> : vector<8xf32>
    %63 = vector.multi_reduction <add>, %62, %cst_31 [1] : vector<8x8xf32> to vector<8xf32>
    %64 = vector.shape_cast %63 : vector<8xf32> to vector<8x1xf32>
    %65 = tpu.reciprocal %64 {approx = true} : vector<8x1xf32> -> vector<8x1xf32>
    %66 = vector.broadcast %65 : vector<8x1xf32> to vector<8x8xf32>
    %67 = arith.mulf %62, %66 : vector<8x8xf32>
    %cst_32 = arith.constant dense<0.000000e+00> : vector<8x8xf32>
    %68 = tpu.matmul %67, %54, %cst_32 {dimension_numbers = #tpu.dot_dimension_numbers<[1], [0], [0], [1], [0, 0, 1, 1], [], []>} : vector<8x8xf32>, vector<8x8xf32>, vector<8x8xf32> -> vector<8x8xf32>
    %c0_33 = arith.constant 0 : index
    %c8 = arith.constant 8 : index
    %69 = vector.load %arg8[%c0_33, %c8] : memref<8x32xf32, #tpu.memory_space<vmem>>, vector<8x8xf32>
    tpu.vector_store %arg8[%c0_33, %c8], %68 {strides = array<i32>} : memref<8x32xf32, #tpu.memory_space<vmem>>, vector<8x8xf32>,
    %70 = vector.extract_strided_slice %27 {offsets = [0, 16], sizes = [8, 8], strides = [1, 1]} : vector<8x32xf32> to vector<8x8xf32>
    %71 = vector.extract_strided_slice %30 {offsets = [0, 16], sizes = [8, 8], strides = [1, 1]} : vector<8x32xf32> to vector<8x8xf32>
    %72 = vector.extract_strided_slice %33 {offsets = [0, 16], sizes = [8, 8], strides = [1, 1]} : vector<8x32xf32> to vector<8x8xf32>
    %cst_34 = arith.constant dense<0.000000e+00> : vector<8x8xf32>
    %73 = tpu.matmul %70, %71, %cst_34 {dimension_numbers = #tpu.dot_dimension_numbers<[1], [1], [0], [0], [0, 0, 1, 0], [], []>} : vector<8x8xf32>, vector<8x8xf32>, vector<8x8xf32> -> vector<8x8xf32>
    %cst_35 = arith.constant 0.353553385 : f32
    %74 = vector.broadcast %cst_35 : f32 to vector<8x8xf32>
    %75 = arith.mulf %73, %74 : vector<8x8xf32>
    %cst_36 = arith.constant dense<0xFF800000> : vector<8xf32>
    %76 = vector.multi_reduction <maximumf>, %75, %cst_36 [1] : vector<8x8xf32> to vector<8xf32>
    %77 = vector.shape_cast %76 : vector<8xf32> to vector<8x1xf32>
    %78 = vector.broadcast %77 : vector<8x1xf32> to vector<8x8xf32>
    %79 = arith.subf %75, %78 : vector<8x8xf32>
    %80 = math.exp %79 : vector<8x8xf32>
    %cst_37 = arith.constant dense<0.000000e+00> : vector<8xf32>
    %81 = vector.multi_reduction <add>, %80, %cst_37 [1] : vector<8x8xf32> to vector<8xf32>
    %82 = vector.shape_cast %81 : vector<8xf32> to vector<8x1xf32>
    %83 = tpu.reciprocal %82 {approx = true} : vector<8x1xf32> -> vector<8x1xf32>
    %84 = vector.broadcast %83 : vector<8x1xf32> to vector<8x8xf32>
    %85 = arith.mulf %80, %84 : vector<8x8xf32>
    %cst_38 = arith.constant dense<0.000000e+00> : vector<8x8xf32>
    %86 = tpu.matmul %85, %72, %cst_38 {dimension_numbers = #tpu.dot_dimension_numbers<[1], [0], [0], [1], [0, 0, 1, 1], [], []>} : vector<8x8xf32>, vector<8x8xf32>, vector<8x8xf32> -> vector<8x8xf32>
    %c0_39 = arith.constant 0 : index
    %c16 = arith.constant 16 : index
    %87 = vector.load %arg8[%c0_39, %c16] : memref<8x32xf32, #tpu.memory_space<vmem>>, vector<8x8xf32>
    tpu.vector_store %arg8[%c0_39, %c16], %86 {strides = array<i32>} : memref<8x32xf32, #tpu.memory_space<vmem>>, vector<8x8xf32>,
    %88 = vector.extract_strided_slice %27 {offsets = [0, 24], sizes = [8, 8], strides = [1, 1]} : vector<8x32xf32> to vector<8x8xf32>
    %89 = vector.extract_strided_slice %30 {offsets = [0, 24], sizes = [8, 8], strides = [1, 1]} : vector<8x32xf32> to vector<8x8xf32>
    %90 = vector.extract_strided_slice %33 {offsets = [0, 24], sizes = [8, 8], strides = [1, 1]} : vector<8x32xf32> to vector<8x8xf32>
    %cst_40 = arith.constant dense<0.000000e+00> : vector<8x8xf32>
    %91 = tpu.matmul %88, %89, %cst_40 {dimension_numbers = #tpu.dot_dimension_numbers<[1], [1], [0], [0], [0, 0, 1, 0], [], []>} : vector<8x8xf32>, vector<8x8xf32>, vector<8x8xf32> -> vector<8x8xf32>
    %cst_41 = arith.constant 0.353553385 : f32
    %92 = vector.broadcast %cst_41 : f32 to vector<8x8xf32>
    %93 = arith.mulf %91, %92 : vector<8x8xf32>
    %cst_42 = arith.constant dense<0xFF800000> : vector<8xf32>
    %94 = vector.multi_reduction <maximumf>, %93, %cst_42 [1] : vector<8x8xf32> to vector<8xf32>
    %95 = vector.shape_cast %94 : vector<8xf32> to vector<8x1xf32>
    %96 = vector.broadcast %95 : vector<8x1xf32> to vector<8x8xf32>
    %97 = arith.subf %93, %96 : vector<8x8xf32>
    %98 = math.exp %97 : vector<8x8xf32>
    %cst_43 = arith.constant dense<0.000000e+00> : vector<8xf32>
    %99 = vector.multi_reduction <add>, %98, %cst_43 [1] : vector<8x8xf32> to vector<8xf32>
    %100 = vector.shape_cast %99 : vector<8xf32> to vector<8x1xf32>
    %101 = tpu.reciprocal %100 {approx = true} : vector<8x1xf32> -> vector<8x1xf32>
    %102 = vector.broadcast %101 : vector<8x1xf32> to vector<8x8xf32>
    %103 = arith.mulf %98, %102 : vector<8x8xf32>
    %cst_44 = arith.constant dense<0.000000e+00> : vector<8x8xf32>
    %104 = tpu.matmul %103, %90, %cst_44 {dimension_numbers = #tpu.dot_dimension_numbers<[1], [0], [0], [1], [0, 0, 1, 1], [], []>} : vector<8x8xf32>, vector<8x8xf32>, vector<8x8xf32> -> vector<8x8xf32>
    %c0_45 = arith.constant 0 : index
    %c24 = arith.constant 24 : index
    %105 = vector.load %arg8[%c0_45, %c24] : memref<8x32xf32, #tpu.memory_space<vmem>>, vector<8x8xf32>
    tpu.vector_store %arg8[%c0_45, %c24], %104 {strides = array<i32>} : memref<8x32xf32, #tpu.memory_space<vmem>>, vector<8x8xf32>,
    %c0_46 = arith.constant 0 : index
    %c0_47 = arith.constant 0 : index
    %106 = vector.load %arg8[%c0_46, %c0_47] : memref<8x32xf32, #tpu.memory_space<vmem>>, vector<8x32xf32>
    %cst_48 = arith.constant dense<0.000000e+00> : vector<8x32xf32>
    %107 = tpu.matmul %106, %8, %cst_48 {dimension_numbers = #tpu.dot_dimension_numbers<[1], [0], [0], [1], [0, 0, 1, 1], [], []>} : vector<8x32xf32>, vector<32x32xf32>, vector<8x32xf32> -> vector<8x32xf32>
    %108 = vector.broadcast %18 : vector<1x32xf32> to vector<8x32xf32>
    %109 = arith.addf %107, %108 : vector<8x32xf32>
    %110 = arith.addf %0, %109 : vector<8x32xf32>
    %cst_49 = arith.constant dense<0.000000e+00> : vector<8xf32>
    %111 = vector.multi_reduction <add>, %110, %cst_49 [1] : vector<8x32xf32> to vector<8xf32>
    %112 = vector.shape_cast %111 : vector<8xf32> to vector<8x1xf32>
    %cst_50 = arith.constant 3.200000e+01 : f32
    %113 = vector.broadcast %cst_50 : f32 to vector<8x1xf32>
    %114 = arith.divf %112, %113 : vector<8x1xf32>
    %115 = vector.broadcast %114 : vector<8x1xf32> to vector<8x32xf32>
    %116 = arith.subf %110, %115 : vector<8x32xf32>
    %117 = arith.mulf %116, %116 : vector<8x32xf32>
    %cst_51 = arith.constant dense<0.000000e+00> : vector<8xf32>
    %118 = vector.multi_reduction <add>, %117, %cst_51 [1] : vector<8x32xf32> to vector<8xf32>
    %119 = vector.shape_cast %118 : vector<8xf32> to vector<8x1xf32>
    %cst_52 = arith.constant 3.200000e+01 : f32
    %120 = vector.broadcast %cst_52 : f32 to vector<8x1xf32>
    %121 = arith.divf %119, %120 : vector<8x1xf32>
    %122 = vector.broadcast %114 : vector<8x1xf32> to vector<8x32xf32>
    %123 = arith.subf %110, %122 : vector<8x32xf32>
    %cst_53 = arith.constant 9.99999974E-6 : f32
    %124 = vector.broadcast %cst_53 : f32 to vector<8x1xf32>
    %125 = arith.addf %121, %124 : vector<8x1xf32>
    %126 = math.rsqrt %125 : vector<8x1xf32>
    %127 = vector.broadcast %126 : vector<8x1xf32> to vector<8x32xf32>
    %128 = arith.mulf %123, %127 : vector<8x32xf32>
    %129 = vector.broadcast %19 : vector<1x32xf32> to vector<8x32xf32>
    %130 = arith.mulf %128, %129 : vector<8x32xf32>
    %131 = vector.broadcast %20 : vector<1x32xf32> to vector<8x32xf32>
    %132 = arith.addf %130, %131 : vector<8x32xf32>
    %cst_54 = arith.constant dense<0.000000e+00> : vector<8x64xf32>
    %133 = tpu.matmul %132, %10, %cst_54 {dimension_numbers = #tpu.dot_dimension_numbers<[1], [0], [0], [1], [0, 0, 1, 1], [], []>} : vector<8x32xf32>, vector<32x64xf32>, vector<8x64xf32> -> vector<8x64xf32>
    %134 = vector.broadcast %21 : vector<1x64xf32> to vector<8x64xf32>
    %135 = arith.addf %133, %134 : vector<8x64xf32>
    %cst_55 = arith.constant 0.000000e+00 : f32
    %136 = vector.broadcast %cst_55 : f32 to vector<8x64xf32>
    %137 = arith.maximumf %135, %136 : vector<8x64xf32>
    %cst_56 = arith.constant dense<0.000000e+00> : vector<8x32xf32>
    %138 = tpu.matmul %137, %12, %cst_56 {dimension_numbers = #tpu.dot_dimension_numbers<[1], [1], [0], [0], [0, 0, 1, 0], [], []>} : vector<8x64xf32>, vector<32x64xf32>, vector<8x32xf32> -> vector<8x32xf32>
    %139 = vector.broadcast %22 : vector<1x32xf32> to vector<8x32xf32>
    %140 = arith.addf %138, %139 : vector<8x32xf32>
    %141 = arith.addf %132, %140 : vector<8x32xf32>
    %cst_57 = arith.constant dense<0.000000e+00> : vector<8xf32>
    %142 = vector.multi_reduction <add>, %141, %cst_57 [1] : vector<8x32xf32> to vector<8xf32>
    %143 = vector.shape_cast %142 : vector<8xf32> to vector<8x1xf32>
    %cst_58 = arith.constant 3.200000e+01 : f32
    %144 = vector.broadcast %cst_58 : f32 to vector<8x1xf32>
    %145 = arith.divf %143, %144 : vector<8x1xf32>
    %146 = vector.broadcast %145 : vector<8x1xf32> to vector<8x32xf32>
    %147 = arith.subf %141, %146 : vector<8x32xf32>
    %148 = arith.mulf %147, %147 : vector<8x32xf32>
    %cst_59 = arith.constant dense<0.000000e+00> : vector<8xf32>
    %149 = vector.multi_reduction <add>, %148, %cst_59 [1] : vector<8x32xf32> to vector<8xf32>
    %150 = vector.shape_cast %149 : vector<8xf32> to vector<8x1xf32>
    %cst_60 = arith.constant 3.200000e+01 : f32
    %151 = vector.broadcast %cst_60 : f32 to vector<8x1xf32>
    %152 = arith.divf %150, %151 : vector<8x1xf32>
    %153 = vector.broadcast %145 : vector<8x1xf32> to vector<8x32xf32>
    %154 = arith.subf %141, %153 : vector<8x32xf32>
    %cst_61 = arith.constant 9.99999974E-6 : f32
    %155 = vector.broadcast %cst_61 : f32 to vector<8x1xf32>
    %156 = arith.addf %152, %155 : vector<8x1xf32>
    %157 = math.rsqrt %156 : vector<8x1xf32>
    %158 = vector.broadcast %157 : vector<8x1xf32> to vector<8x32xf32>
    %159 = arith.mulf %154, %158 : vector<8x32xf32>
    %160 = vector.broadcast %23 : vector<1x32xf32> to vector<8x32xf32>
    %161 = arith.mulf %159, %160 : vector<8x32xf32>
    %162 = vector.broadcast %24 : vector<1x32xf32> to vector<8x32xf32>
    %163 = arith.addf %161, %162 : vector<8x32xf32>
    %c4 = arith.constant 4 : index
    %c0_62 = arith.constant 0 : index
    %c0_63 = arith.constant 0 : index
    %164 = vector.load %arg2[%c4, %c0_62, %c0_63] : memref<8x32x32xf32, #tpu.memory_space<vmem>>, vector<1x32x32xf32>
    %165 = vector.shape_cast %164 : vector<1x32x32xf32> to vector<32x32xf32>
    %c5 = arith.constant 5 : index
    %c0_64 = arith.constant 0 : index
    %c0_65 = arith.constant 0 : index
    %166 = vector.load %arg2[%c5, %c0_64, %c0_65] : memref<8x32x32xf32, #tpu.memory_space<vmem>>, vector<1x32x32xf32>
    %167 = vector.shape_cast %166 : vector<1x32x32xf32> to vector<32x32xf32>
    %c6 = arith.constant 6 : index
    %c0_66 = arith.constant 0 : index
    %c0_67 = arith.constant 0 : index
    %168 = vector.load %arg2[%c6, %c0_66, %c0_67] : memref<8x32x32xf32, #tpu.memory_space<vmem>>, vector<1x32x32xf32>
    %169 = vector.shape_cast %168 : vector<1x32x32xf32> to vector<32x32xf32>
    %c7 = arith.constant 7 : index
    %c0_68 = arith.constant 0 : index
    %c0_69 = arith.constant 0 : index
    %170 = vector.load %arg2[%c7, %c0_68, %c0_69] : memref<8x32x32xf32, #tpu.memory_space<vmem>>, vector<1x32x32xf32>
    %171 = vector.shape_cast %170 : vector<1x32x32xf32> to vector<32x32xf32>
    %c2_70 = arith.constant 2 : index
    %c0_71 = arith.constant 0 : index
    %c0_72 = arith.constant 0 : index
    %172 = vector.load %arg3[%c2_70, %c0_71, %c0_72] : memref<4x32x64xf32, #tpu.memory_space<vmem>>, vector<1x32x64xf32>
    %173 = vector.shape_cast %172 : vector<1x32x64xf32> to vector<32x64xf32>
    %c3_73 = arith.constant 3 : index
    %c0_74 = arith.constant 0 : index
    %c0_75 = arith.constant 0 : index
    %174 = vector.load %arg3[%c3_73, %c0_74, %c0_75] : memref<4x32x64xf32, #tpu.memory_space<vmem>>, vector<1x32x64xf32>
    %175 = vector.shape_cast %174 : vector<1x32x64xf32> to vector<32x64xf32>
    %c1_76 = arith.constant 1 : index
    %c0_77 = arith.constant 0 : index
    %c0_78 = arith.constant 0 : index
    %176 = vector.load %arg4[%c1_76, %c0_77, %c0_78] : memref<2x10x64xf32, #tpu.memory_space<vmem>>, vector<1x10x64xf32>
    %177 = vector.shape_cast %176 : vector<1x10x64xf32> to vector<10x64xf32>
    %178 = vector.extract_strided_slice %177 {offsets = [0, 0], sizes = [1, 32], strides = [1, 1]} : vector<10x64xf32> to vector<1x32xf32>
    %179 = vector.extract_strided_slice %177 {offsets = [1, 0], sizes = [1, 32], strides = [1, 1]} : vector<10x64xf32> to vector<1x32xf32>
    %180 = vector.extract_strided_slice %177 {offsets = [2, 0], sizes = [1, 32], strides = [1, 1]} : vector<10x64xf32> to vector<1x32xf32>
    %181 = vector.extract_strided_slice %177 {offsets = [3, 0], sizes = [1, 32], strides = [1, 1]} : vector<10x64xf32> to vector<1x32xf32>
    %182 = vector.extract_strided_slice %177 {offsets = [4, 0], sizes = [1, 32], strides = [1, 1]} : vector<10x64xf32> to vector<1x32xf32>
    %183 = vector.extract_strided_slice %177 {offsets = [5, 0], sizes = [1, 32], strides = [1, 1]} : vector<10x64xf32> to vector<1x32xf32>
    %184 = vector.extract_strided_slice %177 {offsets = [6, 0], sizes = [1, 64], strides = [1, 1]} : vector<10x64xf32> to vector<1x64xf32>
    %185 = vector.extract_strided_slice %177 {offsets = [7, 0], sizes = [1, 32], strides = [1, 1]} : vector<10x64xf32> to vector<1x32xf32>
    %186 = vector.extract_strided_slice %177 {offsets = [8, 0], sizes = [1, 32], strides = [1, 1]} : vector<10x64xf32> to vector<1x32xf32>
    %187 = vector.extract_strided_slice %177 {offsets = [9, 0], sizes = [1, 32], strides = [1, 1]} : vector<10x64xf32> to vector<1x32xf32>
    %cst_79 = arith.constant dense<0.000000e+00> : vector<8x32xf32>
    %188 = tpu.matmul %163, %165, %cst_79 {dimension_numbers = #tpu.dot_dimension_numbers<[1], [0], [0], [1], [0, 0, 1, 1], [], []>} : vector<8x32xf32>, vector<32x32xf32>, vector<8x32xf32> -> vector<8x32xf32>
    %189 = vector.broadcast %178 : vector<1x32xf32> to vector<8x32xf32>
    %190 = arith.addf %188, %189 : vector<8x32xf32>
    %cst_80 = arith.constant dense<0.000000e+00> : vector<8x32xf32>
    %191 = tpu.matmul %163, %167, %cst_80 {dimension_numbers = #tpu.dot_dimension_numbers<[1], [0], [0], [1], [0, 0, 1, 1], [], []>} : vector<8x32xf32>, vector<32x32xf32>, vector<8x32xf32> -> vector<8x32xf32>
    %192 = vector.broadcast %179 : vector<1x32xf32> to vector<8x32xf32>
    %193 = arith.addf %191, %192 : vector<8x32xf32>
    %cst_81 = arith.constant dense<0.000000e+00> : vector<8x32xf32>
    %194 = tpu.matmul %163, %169, %cst_81 {dimension_numbers = #tpu.dot_dimension_numbers<[1], [0], [0], [1], [0, 0, 1, 1], [], []>} : vector<8x32xf32>, vector<32x32xf32>, vector<8x32xf32> -> vector<8x32xf32>
    %195 = vector.broadcast %180 : vector<1x32xf32> to vector<8x32xf32>
    %196 = arith.addf %194, %195 : vector<8x32xf32>
    %197 = vector.extract_strided_slice %190 {offsets = [0, 0], sizes = [8, 8], strides = [1, 1]} : vector<8x32xf32> to vector<8x8xf32>
    %198 = vector.extract_strided_slice %193 {offsets = [0, 0], sizes = [8, 8], strides = [1, 1]} : vector<8x32xf32> to vector<8x8xf32>
    %199 = vector.extract_strided_slice %196 {offsets = [0, 0], sizes = [8, 8], strides = [1, 1]} : vector<8x32xf32> to vector<8x8xf32>
    %cst_82 = arith.constant dense<0.000000e+00> : vector<8x8xf32>
    %200 = tpu.matmul %197, %198, %cst_82 {dimension_numbers = #tpu.dot_dimension_numbers<[1], [1], [0], [0], [0, 0, 1, 0], [], []>} : vector<8x8xf32>, vector<8x8xf32>, vector<8x8xf32> -> vector<8x8xf32>
    %cst_83 = arith.constant 0.353553385 : f32
    %201 = vector.broadcast %cst_83 : f32 to vector<8x8xf32>
    %202 = arith.mulf %200, %201 : vector<8x8xf32>
    %cst_84 = arith.constant dense<0xFF800000> : vector<8xf32>
    %203 = vector.multi_reduction <maximumf>, %202, %cst_84 [1] : vector<8x8xf32> to vector<8xf32>
    %204 = vector.shape_cast %203 : vector<8xf32> to vector<8x1xf32>
    %205 = vector.broadcast %204 : vector<8x1xf32> to vector<8x8xf32>
    %206 = arith.subf %202, %205 : vector<8x8xf32>
    %207 = math.exp %206 : vector<8x8xf32>
    %cst_85 = arith.constant dense<0.000000e+00> : vector<8xf32>
    %208 = vector.multi_reduction <add>, %207, %cst_85 [1] : vector<8x8xf32> to vector<8xf32>
    %209 = vector.shape_cast %208 : vector<8xf32> to vector<8x1xf32>
    %210 = tpu.reciprocal %209 {approx = true} : vector<8x1xf32> -> vector<8x1xf32>
    %211 = vector.broadcast %210 : vector<8x1xf32> to vector<8x8xf32>
    %212 = arith.mulf %207, %211 : vector<8x8xf32>
    %cst_86 = arith.constant dense<0.000000e+00> : vector<8x8xf32>
    %213 = tpu.matmul %212, %199, %cst_86 {dimension_numbers = #tpu.dot_dimension_numbers<[1], [0], [0], [1], [0, 0, 1, 1], [], []>} : vector<8x8xf32>, vector<8x8xf32>, vector<8x8xf32> -> vector<8x8xf32>
    %c0_87 = arith.constant 0 : index
    %c0_88 = arith.constant 0 : index
    %214 = vector.load %arg8[%c0_87, %c0_88] : memref<8x32xf32, #tpu.memory_space<vmem>>, vector<8x8xf32>
    tpu.vector_store %arg8[%c0_87, %c0_88], %213 {strides = array<i32>} : memref<8x32xf32, #tpu.memory_space<vmem>>, vector<8x8xf32>,
    %215 = vector.extract_strided_slice %190 {offsets = [0, 8], sizes = [8, 8], strides = [1, 1]} : vector<8x32xf32> to vector<8x8xf32>
    %216 = vector.extract_strided_slice %193 {offsets = [0, 8], sizes = [8, 8], strides = [1, 1]} : vector<8x32xf32> to vector<8x8xf32>
    %217 = vector.extract_strided_slice %196 {offsets = [0, 8], sizes = [8, 8], strides = [1, 1]} : vector<8x32xf32> to vector<8x8xf32>
    %cst_89 = arith.constant dense<0.000000e+00> : vector<8x8xf32>
    %218 = tpu.matmul %215, %216, %cst_89 {dimension_numbers = #tpu.dot_dimension_numbers<[1], [1], [0], [0], [0, 0, 1, 0], [], []>} : vector<8x8xf32>, vector<8x8xf32>, vector<8x8xf32> -> vector<8x8xf32>
    %cst_90 = arith.constant 0.353553385 : f32
    %219 = vector.broadcast %cst_90 : f32 to vector<8x8xf32>
    %220 = arith.mulf %218, %219 : vector<8x8xf32>
    %cst_91 = arith.constant dense<0xFF800000> : vector<8xf32>
    %221 = vector.multi_reduction <maximumf>, %220, %cst_91 [1] : vector<8x8xf32> to vector<8xf32>
    %222 = vector.shape_cast %221 : vector<8xf32> to vector<8x1xf32>
    %223 = vector.broadcast %222 : vector<8x1xf32> to vector<8x8xf32>
    %224 = arith.subf %220, %223 : vector<8x8xf32>
    %225 = math.exp %224 : vector<8x8xf32>
    %cst_92 = arith.constant dense<0.000000e+00> : vector<8xf32>
    %226 = vector.multi_reduction <add>, %225, %cst_92 [1] : vector<8x8xf32> to vector<8xf32>
    %227 = vector.shape_cast %226 : vector<8xf32> to vector<8x1xf32>
    %228 = tpu.reciprocal %227 {approx = true} : vector<8x1xf32> -> vector<8x1xf32>
    %229 = vector.broadcast %228 : vector<8x1xf32> to vector<8x8xf32>
    %230 = arith.mulf %225, %229 : vector<8x8xf32>
    %cst_93 = arith.constant dense<0.000000e+00> : vector<8x8xf32>
    %231 = tpu.matmul %230, %217, %cst_93 {dimension_numbers = #tpu.dot_dimension_numbers<[1], [0], [0], [1], [0, 0, 1, 1], [], []>} : vector<8x8xf32>, vector<8x8xf32>, vector<8x8xf32> -> vector<8x8xf32>
    %c0_94 = arith.constant 0 : index
    %c8_95 = arith.constant 8 : index
    %232 = vector.load %arg8[%c0_94, %c8_95] : memref<8x32xf32, #tpu.memory_space<vmem>>, vector<8x8xf32>
    tpu.vector_store %arg8[%c0_94, %c8_95], %231 {strides = array<i32>} : memref<8x32xf32, #tpu.memory_space<vmem>>, vector<8x8xf32>,
    %233 = vector.extract_strided_slice %190 {offsets = [0, 16], sizes = [8, 8], strides = [1, 1]} : vector<8x32xf32> to vector<8x8xf32>
    %234 = vector.extract_strided_slice %193 {offsets = [0, 16], sizes = [8, 8], strides = [1, 1]} : vector<8x32xf32> to vector<8x8xf32>
    %235 = vector.extract_strided_slice %196 {offsets = [0, 16], sizes = [8, 8], strides = [1, 1]} : vector<8x32xf32> to vector<8x8xf32>
    %cst_96 = arith.constant dense<0.000000e+00> : vector<8x8xf32>
    %236 = tpu.matmul %233, %234, %cst_96 {dimension_numbers = #tpu.dot_dimension_numbers<[1], [1], [0], [0], [0, 0, 1, 0], [], []>} : vector<8x8xf32>, vector<8x8xf32>, vector<8x8xf32> -> vector<8x8xf32>
    %cst_97 = arith.constant 0.353553385 : f32
    %237 = vector.broadcast %cst_97 : f32 to vector<8x8xf32>
    %238 = arith.mulf %236, %237 : vector<8x8xf32>
    %cst_98 = arith.constant dense<0xFF800000> : vector<8xf32>
    %239 = vector.multi_reduction <maximumf>, %238, %cst_98 [1] : vector<8x8xf32> to vector<8xf32>
    %240 = vector.shape_cast %239 : vector<8xf32> to vector<8x1xf32>
    %241 = vector.broadcast %240 : vector<8x1xf32> to vector<8x8xf32>
    %242 = arith.subf %238, %241 : vector<8x8xf32>
    %243 = math.exp %242 : vector<8x8xf32>
    %cst_99 = arith.constant dense<0.000000e+00> : vector<8xf32>
    %244 = vector.multi_reduction <add>, %243, %cst_99 [1] : vector<8x8xf32> to vector<8xf32>
    %245 = vector.shape_cast %244 : vector<8xf32> to vector<8x1xf32>
    %246 = tpu.reciprocal %245 {approx = true} : vector<8x1xf32> -> vector<8x1xf32>
    %247 = vector.broadcast %246 : vector<8x1xf32> to vector<8x8xf32>
    %248 = arith.mulf %243, %247 : vector<8x8xf32>
    %cst_100 = arith.constant dense<0.000000e+00> : vector<8x8xf32>
    %249 = tpu.matmul %248, %235, %cst_100 {dimension_numbers = #tpu.dot_dimension_numbers<[1], [0], [0], [1], [0, 0, 1, 1], [], []>} : vector<8x8xf32>, vector<8x8xf32>, vector<8x8xf32> -> vector<8x8xf32>
    %c0_101 = arith.constant 0 : index
    %c16_102 = arith.constant 16 : index
    %250 = vector.load %arg8[%c0_101, %c16_102] : memref<8x32xf32, #tpu.memory_space<vmem>>, vector<8x8xf32>
    tpu.vector_store %arg8[%c0_101, %c16_102], %249 {strides = array<i32>} : memref<8x32xf32, #tpu.memory_space<vmem>>, vector<8x8xf32>,
    %251 = vector.extract_strided_slice %190 {offsets = [0, 24], sizes = [8, 8], strides = [1, 1]} : vector<8x32xf32> to vector<8x8xf32>
    %252 = vector.extract_strided_slice %193 {offsets = [0, 24], sizes = [8, 8], strides = [1, 1]} : vector<8x32xf32> to vector<8x8xf32>
    %253 = vector.extract_strided_slice %196 {offsets = [0, 24], sizes = [8, 8], strides = [1, 1]} : vector<8x32xf32> to vector<8x8xf32>
    %cst_103 = arith.constant dense<0.000000e+00> : vector<8x8xf32>
    %254 = tpu.matmul %251, %252, %cst_103 {dimension_numbers = #tpu.dot_dimension_numbers<[1], [1], [0], [0], [0, 0, 1, 0], [], []>} : vector<8x8xf32>, vector<8x8xf32>, vector<8x8xf32> -> vector<8x8xf32>
    %cst_104 = arith.constant 0.353553385 : f32
    %255 = vector.broadcast %cst_104 : f32 to vector<8x8xf32>
    %256 = arith.mulf %254, %255 : vector<8x8xf32>
    %cst_105 = arith.constant dense<0xFF800000> : vector<8xf32>
    %257 = vector.multi_reduction <maximumf>, %256, %cst_105 [1] : vector<8x8xf32> to vector<8xf32>
    %258 = vector.shape_cast %257 : vector<8xf32> to vector<8x1xf32>
    %259 = vector.broadcast %258 : vector<8x1xf32> to vector<8x8xf32>
    %260 = arith.subf %256, %259 : vector<8x8xf32>
    %261 = math.exp %260 : vector<8x8xf32>
    %cst_106 = arith.constant dense<0.000000e+00> : vector<8xf32>
    %262 = vector.multi_reduction <add>, %261, %cst_106 [1] : vector<8x8xf32> to vector<8xf32>
    %263 = vector.shape_cast %262 : vector<8xf32> to vector<8x1xf32>
    %264 = tpu.reciprocal %263 {approx = true} : vector<8x1xf32> -> vector<8x1xf32>
    %265 = vector.broadcast %264 : vector<8x1xf32> to vector<8x8xf32>
    %266 = arith.mulf %261, %265 : vector<8x8xf32>
    %cst_107 = arith.constant dense<0.000000e+00> : vector<8x8xf32>
    %267 = tpu.matmul %266, %253, %cst_107 {dimension_numbers = #tpu.dot_dimension_numbers<[1], [0], [0], [1], [0, 0, 1, 1], [], []>} : vector<8x8xf32>, vector<8x8xf32>, vector<8x8xf32> -> vector<8x8xf32>
    %c0_108 = arith.constant 0 : index
    %c24_109 = arith.constant 24 : index
    %268 = vector.load %arg8[%c0_108, %c24_109] : memref<8x32xf32, #tpu.memory_space<vmem>>, vector<8x8xf32>
    tpu.vector_store %arg8[%c0_108, %c24_109], %267 {strides = array<i32>} : memref<8x32xf32, #tpu.memory_space<vmem>>, vector<8x8xf32>,
    %c0_110 = arith.constant 0 : index
    %c0_111 = arith.constant 0 : index
    %269 = vector.load %arg8[%c0_110, %c0_111] : memref<8x32xf32, #tpu.memory_space<vmem>>, vector<8x32xf32>
    %cst_112 = arith.constant dense<0.000000e+00> : vector<8x32xf32>
    %270 = tpu.matmul %269, %171, %cst_112 {dimension_numbers = #tpu.dot_dimension_numbers<[1], [0], [0], [1], [0, 0, 1, 1], [], []>} : vector<8x32xf32>, vector<32x32xf32>, vector<8x32xf32> -> vector<8x32xf32>
    %271 = vector.broadcast %181 : vector<1x32xf32> to vector<8x32xf32>
    %272 = arith.addf %270, %271 : vector<8x32xf32>
    %273 = arith.addf %163, %272 : vector<8x32xf32>
    %cst_113 = arith.constant dense<0.000000e+00> : vector<8xf32>
    %274 = vector.multi_reduction <add>, %273, %cst_113 [1] : vector<8x32xf32> to vector<8xf32>
    %275 = vector.shape_cast %274 : vector<8xf32> to vector<8x1xf32>
    %cst_114 = arith.constant 3.200000e+01 : f32
    %276 = vector.broadcast %cst_114 : f32 to vector<8x1xf32>
    %277 = arith.divf %275, %276 : vector<8x1xf32>
    %278 = vector.broadcast %277 : vector<8x1xf32> to vector<8x32xf32>
    %279 = arith.subf %273, %278 : vector<8x32xf32>
    %280 = arith.mulf %279, %279 : vector<8x32xf32>
    %cst_115 = arith.constant dense<0.000000e+00> : vector<8xf32>
    %281 = vector.multi_reduction <add>, %280, %cst_115 [1] : vector<8x32xf32> to vector<8xf32>
    %282 = vector.shape_cast %281 : vector<8xf32> to vector<8x1xf32>
    %cst_116 = arith.constant 3.200000e+01 : f32
    %283 = vector.broadcast %cst_116 : f32 to vector<8x1xf32>
    %284 = arith.divf %282, %283 : vector<8x1xf32>
    %285 = vector.broadcast %277 : vector<8x1xf32> to vector<8x32xf32>
    %286 = arith.subf %273, %285 : vector<8x32xf32>
    %cst_117 = arith.constant 9.99999974E-6 : f32
    %287 = vector.broadcast %cst_117 : f32 to vector<8x1xf32>
    %288 = arith.addf %284, %287 : vector<8x1xf32>
    %289 = math.rsqrt %288 : vector<8x1xf32>
    %290 = vector.broadcast %289 : vector<8x1xf32> to vector<8x32xf32>
    %291 = arith.mulf %286, %290 : vector<8x32xf32>
    %292 = vector.broadcast %182 : vector<1x32xf32> to vector<8x32xf32>
    %293 = arith.mulf %291, %292 : vector<8x32xf32>
    %294 = vector.broadcast %183 : vector<1x32xf32> to vector<8x32xf32>
    %295 = arith.addf %293, %294 : vector<8x32xf32>
    %cst_118 = arith.constant dense<0.000000e+00> : vector<8x64xf32>
    %296 = tpu.matmul %295, %173, %cst_118 {dimension_numbers = #tpu.dot_dimension_numbers<[1], [0], [0], [1], [0, 0, 1, 1], [], []>} : vector<8x32xf32>, vector<32x64xf32>, vector<8x64xf32> -> vector<8x64xf32>
    %297 = vector.broadcast %184 : vector<1x64xf32> to vector<8x64xf32>
    %298 = arith.addf %296, %297 : vector<8x64xf32>
    %cst_119 = arith.constant 0.000000e+00 : f32
    %299 = vector.broadcast %cst_119 : f32 to vector<8x64xf32>
    %300 = arith.maximumf %298, %299 : vector<8x64xf32>
    %cst_120 = arith.constant dense<0.000000e+00> : vector<8x32xf32>
    %301 = tpu.matmul %300, %175, %cst_120 {dimension_numbers = #tpu.dot_dimension_numbers<[1], [1], [0], [0], [0, 0, 1, 0], [], []>} : vector<8x64xf32>, vector<32x64xf32>, vector<8x32xf32> -> vector<8x32xf32>
    %302 = vector.broadcast %185 : vector<1x32xf32> to vector<8x32xf32>
    %303 = arith.addf %301, %302 : vector<8x32xf32>
    %304 = arith.addf %295, %303 : vector<8x32xf32>
    %cst_121 = arith.constant dense<0.000000e+00> : vector<8xf32>
    %305 = vector.multi_reduction <add>, %304, %cst_121 [1] : vector<8x32xf32> to vector<8xf32>
    %306 = vector.shape_cast %305 : vector<8xf32> to vector<8x1xf32>
    %cst_122 = arith.constant 3.200000e+01 : f32
    %307 = vector.broadcast %cst_122 : f32 to vector<8x1xf32>
    %308 = arith.divf %306, %307 : vector<8x1xf32>
    %309 = vector.broadcast %308 : vector<8x1xf32> to vector<8x32xf32>
    %310 = arith.subf %304, %309 : vector<8x32xf32>
    %311 = arith.mulf %310, %310 : vector<8x32xf32>
    %cst_123 = arith.constant dense<0.000000e+00> : vector<8xf32>
    %312 = vector.multi_reduction <add>, %311, %cst_123 [1] : vector<8x32xf32> to vector<8xf32>
    %313 = vector.shape_cast %312 : vector<8xf32> to vector<8x1xf32>
    %cst_124 = arith.constant 3.200000e+01 : f32
    %314 = vector.broadcast %cst_124 : f32 to vector<8x1xf32>
    %315 = arith.divf %313, %314 : vector<8x1xf32>
    %316 = vector.broadcast %308 : vector<8x1xf32> to vector<8x32xf32>
    %317 = arith.subf %304, %316 : vector<8x32xf32>
    %cst_125 = arith.constant 9.99999974E-6 : f32
    %318 = vector.broadcast %cst_125 : f32 to vector<8x1xf32>
    %319 = arith.addf %315, %318 : vector<8x1xf32>
    %320 = math.rsqrt %319 : vector<8x1xf32>
    %321 = vector.broadcast %320 : vector<8x1xf32> to vector<8x32xf32>
    %322 = arith.mulf %317, %321 : vector<8x32xf32>
    %323 = vector.broadcast %186 : vector<1x32xf32> to vector<8x32xf32>
    %324 = arith.mulf %322, %323 : vector<8x32xf32>
    %325 = vector.broadcast %187 : vector<1x32xf32> to vector<8x32xf32>
    %326 = arith.addf %324, %325 : vector<8x32xf32>
    %c0_126 = arith.constant 0 : index
    %c0_127 = arith.constant 0 : index
    %c0_128 = arith.constant 0 : index
    %327 = vector.load %arg5[%c0_126, %c0_127, %c0_128] : memref<4x32x32xf32, #tpu.memory_space<vmem>>, vector<1x32x32xf32>
    %328 = vector.shape_cast %327 : vector<1x32x32xf32> to vector<32x32xf32>
    %cst_129 = arith.constant dense<0.000000e+00> : vector<8x32xf32>
    %329 = tpu.matmul %326, %328, %cst_129 {dimension_numbers = #tpu.dot_dimension_numbers<[1], [0], [0], [1], [0, 0, 1, 1], [], []>} : vector<8x32xf32>, vector<32x32xf32>, vector<8x32xf32> -> vector<8x32xf32>
    %c0_130 = arith.constant 0 : index
    %c0_131 = arith.constant 0 : index
    %c0_132 = arith.constant 0 : index
    %330 = vector.load %arg6[%c0_130, %c0_131, %c0_132] : memref<4x1x32xf32, #tpu.memory_space<vmem>>, vector<1x1x32xf32>
    %331 = vector.shape_cast %330 : vector<1x1x32xf32> to vector<1x32xf32>
    %332 = vector.broadcast %331 : vector<1x32xf32> to vector<8x32xf32>
    %333 = arith.addf %329, %332 : vector<8x32xf32>
    %cst_133 = arith.constant 0.000000e+00 : f32
    %334 = vector.broadcast %cst_133 : f32 to vector<8x32xf32>
    %335 = arith.maximumf %333, %334 : vector<8x32xf32>
    %c1_134 = arith.constant 1 : index
    %c0_135 = arith.constant 0 : index
    %c0_136 = arith.constant 0 : index
    %336 = vector.load %arg5[%c1_134, %c0_135, %c0_136] : memref<4x32x32xf32, #tpu.memory_space<vmem>>, vector<1x32x32xf32>
    %337 = vector.shape_cast %336 : vector<1x32x32xf32> to vector<32x32xf32>
    %cst_137 = arith.constant dense<0.000000e+00> : vector<8x32xf32>
    %338 = tpu.matmul %335, %337, %cst_137 {dimension_numbers = #tpu.dot_dimension_numbers<[1], [0], [0], [1], [0, 0, 1, 1], [], []>} : vector<8x32xf32>, vector<32x32xf32>, vector<8x32xf32> -> vector<8x32xf32>
    %c1_138 = arith.constant 1 : index
    %c0_139 = arith.constant 0 : index
    %c0_140 = arith.constant 0 : index
    %339 = vector.load %arg6[%c1_138, %c0_139, %c0_140] : memref<4x1x32xf32, #tpu.memory_space<vmem>>, vector<1x1x32xf32>
    %340 = vector.shape_cast %339 : vector<1x1x32xf32> to vector<1x32xf32>
    %341 = vector.broadcast %340 : vector<1x32xf32> to vector<8x32xf32>
    %342 = arith.addf %338, %341 : vector<8x32xf32>
    %cst_141 = arith.constant 0.000000e+00 : f32
    %343 = vector.broadcast %cst_141 : f32 to vector<8x32xf32>
    %344 = arith.maximumf %342, %343 : vector<8x32xf32>
    %c2_142 = arith.constant 2 : index
    %c0_143 = arith.constant 0 : index
    %c0_144 = arith.constant 0 : index
    %345 = vector.load %arg5[%c2_142, %c0_143, %c0_144] : memref<4x32x32xf32, #tpu.memory_space<vmem>>, vector<1x32x32xf32>
    %346 = vector.shape_cast %345 : vector<1x32x32xf32> to vector<32x32xf32>
    %cst_145 = arith.constant dense<0.000000e+00> : vector<8x32xf32>
    %347 = tpu.matmul %344, %346, %cst_145 {dimension_numbers = #tpu.dot_dimension_numbers<[1], [0], [0], [1], [0, 0, 1, 1], [], []>} : vector<8x32xf32>, vector<32x32xf32>, vector<8x32xf32> -> vector<8x32xf32>
    %c2_146 = arith.constant 2 : index
    %c0_147 = arith.constant 0 : index
    %c0_148 = arith.constant 0 : index
    %348 = vector.load %arg6[%c2_146, %c0_147, %c0_148] : memref<4x1x32xf32, #tpu.memory_space<vmem>>, vector<1x1x32xf32>
    %349 = vector.shape_cast %348 : vector<1x1x32xf32> to vector<1x32xf32>
    %350 = vector.broadcast %349 : vector<1x32xf32> to vector<8x32xf32>
    %351 = arith.addf %347, %350 : vector<8x32xf32>
    %cst_149 = arith.constant 0.000000e+00 : f32
    %352 = vector.broadcast %cst_149 : f32 to vector<8x32xf32>
    %353 = arith.maximumf %351, %352 : vector<8x32xf32>
    %c3_150 = arith.constant 3 : index
    %c0_151 = arith.constant 0 : index
    %c0_152 = arith.constant 0 : index
    %354 = vector.load %arg5[%c3_150, %c0_151, %c0_152] : memref<4x32x32xf32, #tpu.memory_space<vmem>>, vector<1x32x32xf32>
    %355 = vector.shape_cast %354 : vector<1x32x32xf32> to vector<32x32xf32>
    %cst_153 = arith.constant dense<0.000000e+00> : vector<8x32xf32>
    %356 = tpu.matmul %353, %355, %cst_153 {dimension_numbers = #tpu.dot_dimension_numbers<[1], [0], [0], [1], [0, 0, 1, 1], [], []>} : vector<8x32xf32>, vector<32x32xf32>, vector<8x32xf32> -> vector<8x32xf32>
    %c3_154 = arith.constant 3 : index
    %c0_155 = arith.constant 0 : index
    %c0_156 = arith.constant 0 : index
    %357 = vector.load %arg6[%c3_154, %c0_155, %c0_156] : memref<4x1x32xf32, #tpu.memory_space<vmem>>, vector<1x1x32xf32>
    %358 = vector.shape_cast %357 : vector<1x1x32xf32> to vector<1x32xf32>
    %359 = vector.broadcast %358 : vector<1x32xf32> to vector<8x32xf32>
    %360 = arith.addf %356, %359 : vector<8x32xf32>
    %c0_157 = arith.constant 0 : index
    %c0_158 = arith.constant 0 : index
    %361 = vector.load %arg7[%c0_157, %c0_158] : memref<8x32xf32, #tpu.memory_space<vmem>>, vector<8x32xf32>
    tpu.vector_store %arg7[%c0_157, %c0_158], %360 {strides = array<i32>} : memref<8x32xf32, #tpu.memory_space<vmem>>, vector<8x32xf32>,
    return
  }
  func.func @transform_0(%arg0: i32) -> (i32, i32) {
    %c0_i32 = arith.constant 0 : i32
    %c0_i32_0 = arith.constant 0 : i32
    %c0_i32_1 = arith.constant 0 : i32
    return %c0_i32, %c0_i32_0 : i32, i32
  }
  func.func @transform_1(%arg0: i32) -> (i32, i32, i32) {
    %c0_i32 = arith.constant 0 : i32
    %c0_i32_0 = arith.constant 0 : i32
    %c0_i32_1 = arith.constant 0 : i32
    %c0_i32_2 = arith.constant 0 : i32
    return %c0_i32, %c0_i32_0, %c0_i32_1 : i32, i32, i32
  }
  func.func @transform_2(%arg0: i32) -> (i32, i32, i32) {
    %c0_i32 = arith.constant 0 : i32
    %c0_i32_0 = arith.constant 0 : i32
    %c0_i32_1 = arith.constant 0 : i32
    %c0_i32_2 = arith.constant 0 : i32
    return %c0_i32, %c0_i32_0, %c0_i32_1 : i32, i32, i32
  }
  func.func @transform_3(%arg0: i32) -> (i32, i32, i32) {
    %c0_i32 = arith.constant 0 : i32
    %c0_i32_0 = arith.constant 0 : i32
    %c0_i32_1 = arith.constant 0 : i32
    %c0_i32_2 = arith.constant 0 : i32
    return %c0_i32, %c0_i32_0, %c0_i32_1 : i32, i32, i32
  }
  func.func @transform_4(%arg0: i32) -> (i32, i32, i32) {
    %c0_i32 = arith.constant 0 : i32
    %c0_i32_0 = arith.constant 0 : i32
    %c0_i32_1 = arith.constant 0 : i32
    %c0_i32_2 = arith.constant 0 : i32
    return %c0_i32, %c0_i32_0, %c0_i32_1 : i32, i32, i32
  }
  func.func @transform_5(%arg0: i32) -> (i32, i32, i32) {
    %c0_i32 = arith.constant 0 : i32
    %c0_i32_0 = arith.constant 0 : i32
    %c0_i32_1 = arith.constant 0 : i32
    %c0_i32_2 = arith.constant 0 : i32
    return %c0_i32, %c0_i32_0, %c0_i32_1 : i32, i32, i32
  }
  func.func @transform_6(%arg0: i32) -> (i32, i32) {
    %c0_i32 = arith.constant 0 : i32
    %c0_i32_0 = arith.constant 0 : i32
    %c0_i32_1 = arith.constant 0 : i32
    return %c0_i32, %c0_i32_0 : i32, i32
  }
}

</mosaic_0001>

<bundles_post_ra>
// kernel: tpu_custom_call.1
= control target key start
LH: loop header
LB: loop body
LE: loop exit
PB: predicated region body
PF: predicated region fallthrough
CT: control target
= control target key end

     0   :  { %11 = vsyncpa [#allocation4], 0  ;;  %s4012_s0 = inlined_call_operand.vmem [shape: f32[8,32], index: 0, kind: input, shape index: {}]   ;;  %s4013_s1 = inlined_call_operand.hbm [shape: f32[8,32,32], index: 1, kind: input, shape index: {}]   ;;  %s4014_s2 = inlined_call_operand.hbm [shape: f32[4,32,64], index: 2, kind: input, shape index: {}]   ;;  %s4015_s3 = inlined_call_operand.vmem [shape: f32[2,10,64], index: 3, kind: input, shape index: {}]   ;;  %s4016_s4 = inlined_call_operand.hbm [shape: f32[4,32,32], index: 4, kind: input, shape index: {}]   ;;  %s4017_s5 = inlined_call_operand.vmem [shape: f32[4,1,32], index: 5, kind: input, shape index: {}]   ;;  %s4018_s6 = inlined_call_operand.hbm [shape: f32[8,32], index: 6, kind: output, shape index: {}]  }
   0x1   :  { %12 = vsyncpa [#allocation7], 0 }
   0x2   :  { %13 = vsyncpa [#allocation5], 0  ;;  %s3559_s21 = smov [#allocation6]   ;;  %s3560_s23 = smov [#allocation3]  }
   0x3   :  { %s33_s22 = sshll.u32 %s3559_s21, 4  ;;  %s21_s24 = sshll.u32 %s3560_s23, 4  ;;  %s34_s22 = int_to_ptr.vmem [resolvable:$true] %s33_s22  ;;  %s3608_s24 = int_to_ptr.vmem [resolvable:$true] %s21_s24 }
   0x4   :  { %s3465_s27 = scalar_lea.hbm %s4014_s2, 2048 }
   0x5   :  { %p3466_p0 = scmp.ne.s32.totalorder %s4014_s2, %s3465_s27  ;;  %p3469_p1 = scmp.lt.u32.totalorder %s3465_s27, %s4014_s2 }
   0x7   :  { %p3471_p2 = pnand %p3469_p1, %p3466_p0 }
   0x9   :  { %3474 = shalt.err (!%p3471_p2)
}
   0xa   :  { %s3475_s8 = scalar_lea.vmem %s34_s22, 2048  ;;  %p3480_p4 = scmp.lt.s32.totalorder %s34_s22, %s34_s22 }
   0xb   :  { %p3476_p3 = scmp.ne.s32.totalorder %s34_s22, %s3475_s8  ;;  %p3481_p5 = scmp.lt.s32.totalorder %s3475_s8, %s3475_s8 }
   0xd   :  { %p3482_p6 = por %p3481_p5, %p3480_p4 }
   0xf   :  { %p3483_p7 = pnand %p3482_p6, %p3476_p3 }
  0x11   :  { %3486 = shalt.err (!%p3483_p7)
}
  0x12   :  { %s3561_s9 = smov 128   ;;  %s3562_s10 = smov 8  }
  0x13   :  { %39 = dma.hbm_to_vmem [thread:$0]  %s4014_s2, 2048, %s34_s22, [#allocation7], %s3561_s9, %s3561_s9, %s3562_s10  }
  0x14   :  { %s3487_s15 = scalar_lea.hbm %s4013_s1, 4096 }
  0x15   :  { %p3488_p8 = scmp.ne.s32.totalorder %s4013_s1, %s3487_s15  ;;  %p3491_p9 = scmp.lt.u32.totalorder %s3487_s15, %s4013_s1 }
  0x17   :  { %p3493_p10 = pnand %p3491_p9, %p3488_p8 }
  0x19   :  { %3496 = shalt.err (!%p3493_p10)
}
  0x1a   :  { %s3497_s20 = scalar_lea.vmem %s3608_s24, 4096  ;;  %p3502_p12 = scmp.lt.s32.totalorder %s3608_s24, %s3608_s24 }
  0x1b   :  { %p3498_p11 = scmp.ne.s32.totalorder %s3608_s24, %s3497_s20  ;;  %p3503_p13 = scmp.lt.s32.totalorder %s3497_s20, %s3497_s20 }
  0x1d   :  { %p3504_p0 = por %p3503_p13, %p3502_p12 }
  0x1f   :  { %p3505_p1 = pnand %p3504_p0, %p3498_p11 }
  0x21   :  { %3508 = shalt.err (!%p3505_p1)
}
  0x22   :  { %27 = dma.hbm_to_vmem [thread:$0]  %s4013_s1, 4096, %s3608_s24, [#allocation4], %s3561_s9, %s3561_s9, %s3562_s10  }
  0x23   :  { %s3563_s22 = smov [#allocation8]   ;;  %s3509_s27 = scalar_lea.hbm %s4016_s4, 2048 }
  0x24   :  { %s47_s23 = sshll.u32 %s3563_s22, 4  ;;  %p3510_p2 = scmp.ne.s32.totalorder %s4016_s4, %s3509_s27  ;;  %s48_s23 = int_to_ptr.vmem [resolvable:$true] %s47_s23 }
  0x25   :  { %p3513_p3 = scmp.lt.u32.totalorder %s3509_s27, %s4016_s4 }
  0x27   :  { %p3515_p4 = pnand %p3513_p3, %p3510_p2 }
  0x29   :  { %3518 = shalt.err (!%p3515_p4)
}
  0x2a   :  { %s3519_s8 = scalar_lea.vmem %s48_s23, 2048  ;;  %p3524_p6 = scmp.lt.s32.totalorder %s48_s23, %s48_s23 }
  0x2b   :  { %p3520_p5 = scmp.ne.s32.totalorder %s48_s23, %s3519_s8  ;;  %p3525_p7 = scmp.lt.s32.totalorder %s3519_s8, %s3519_s8 }
  0x2d   :  { %p3526_p8 = por %p3525_p7, %p3524_p6 }
  0x2f   :  { %p3527_p9 = pnand %p3526_p8, %p3520_p5 }
  0x31   :  { %3530 = shalt.err (!%p3527_p9)
}
  0x32   :  { %53 = dma.hbm_to_vmem [thread:$0]  %s4016_s4, 2048, %s48_s23, [#allocation7], %s3561_s9, %s3561_s9, %s3562_s10  }
  0x33   :  { %3553 = dma.done.wait [#allocation4], 4096  }
  0x34   :  { %3554 = vsyncadd [#allocation4], 4294963200 }
  0x35   :  { %3555 = dma.done.wait [#allocation7], 4096  }
  0x36   :  { %3556 = vsyncadd [#allocation7], 4294963200  ;;  %v3564_v0 = vmov 0.0|0.0   ;;  %vm3565_vm0 = vmmov 0   ;;  %v3566_v1 = vmov 0.0   ;;  %v71_v2 = vld [vmem:[#allocation3 + $0x20] sm:$0xff]  ;;  %v96_v21 = vlaneseq }
  0x37   :  { %3317 = vmatprep.subr.bf16.mxu1 %v3564_v0  ;;  %3311 = vmatprep.subr.bf16.mxu0 %v3564_v0  ;;  %v72_v3 = vld [vmem:[#allocation3 + $0x28] sm:$0xff]  ;;  %v66_v4 = vld [vmem:[#allocation3] sm:$0xff]  ;;  %v73_v7 = vld [vmem:[#allocation3 + $0x30] sm:$0xff]  ;;  %vm100_vm1 = vcmask 261120   ;;  %vm322_vm2 = vcmask 64512   ;;  %s3567_s12 = smov 112  }
  0x38   :  { %3074 = vmatprep.mubr.msk.f32.mxu1 %vm3565_vm0, %v3566_v1  ;;  %3063 = vmatprep.mubr.msk.f32.mxu0 %vm3565_vm0, %v3566_v1  ;;  %v3318_v5 = vpack.c.bf16 %v72_v3, %v71_v2  ;;  %v67_v6 = vld [vmem:[#allocation3 + $0x8] sm:$0xff]  ;;  %v74_v8 = vld [vmem:[#allocation3 + $0x38] sm:$0xff]  ;;  %v68_v10 = vld [vmem:[#allocation3 + $0x10] sm:$0xff]  ;;  %v3689_v22 = vshrl.u32 %v96_v21, 7  ;;  %s3568_s13 = smov 120   ;;  %s3569_s14 = smov 104  }
  0x39   :  { %v3312_v9 = vpack.c.bf16 %v67_v6, %v66_v4  ;;  %v69_v11 = vld [vmem:[#allocation3 + $0x18] sm:$0xff]  ;;  %v3321_v12 = vpack.c.bf16 %v74_v8, %v73_v7  ;;  %v76_v15 = vld [vmem:[#allocation3 + $0x40] sm:$0xff]  ;;  %v77_v16 = vld [vmem:[#allocation3 + $0x48] sm:$0xff]  ;;  %s3570_s15 = smov 16   ;;  %s3571_s16 = smov 24   ;;  %vm656_vm3 = vcmask 130112  }
  0x3a   :  { %3319 = vmatpush3.bf16.msra.mxu1 %v3318_v5  ;;  %v3315_v13 = vpack.c.bf16 %v69_v11, %v68_v10  ;;  %v3671_v14 = vld [vmem:[%s4012_s0] sm:$0xff]  ;;  %v78_v17 = vld [vmem:[#allocation3 + $0x50] sm:$0xff]  ;;  %v3324_v18 = vpack.c.bf16 %v77_v16, %v76_v15  ;;  %v3692_v23 = vsub.s32 1, %v3689_v22  ;;  %v3700_v25 = vsub.s32 0, %v3689_v22  ;;  %s3572_s29 = smov [#allocation9]  }
  0x3b   :  { %3313 = vmatpush3.bf16.msra.mxu0 %v3312_v9  ;;  %3320 = vmatprep.subr.bf16.mxu1 %v3564_v0  ;;  %v79_v19 = vld [vmem:[#allocation3 + $0x58] sm:$0xff]  ;;  %v250_v34 = vsub.s32 2, %v3689_v22  ;;  %vm828_vm4 = vcmask 195712   ;;  %vm1000_vm5 = vcmask 261312   ;;  %vm1187_vm6 = vcmask 523264   ;;  %s2876_s30 = sshll.u32 %s3572_s29, 4  ;;  %s2877_s30 = int_to_ptr.vmem [resolvable:$true] %s2876_s30 }
  0x3c   :  { %3314 = vmatprep.subr.bf16.mxu0 %v3564_v0  ;;  %v3327_v20 = vpack.c.bf16 %v79_v19, %v78_v17  ;;  %v3697_v24 = vld [vmem:[%s4015_s3] sm:$0xff]  ;;  %vm3792_vm7 = vmpackc.low %vm1187_vm6, %vm1187_vm6  ;;  %s3531_s7 = scalar_lea.vmem %s2877_s30, 128  ;;  %p3536_p11 = scmp.lt.s32.totalorder %s2877_s30, %s2877_s30 }
  0x3d   :  { %v177_v26 = vrot.slane %v3697_v24, %v3692_v23  ;;  %v99_v27 = vrot.slane %v3697_v24, %v3700_v25  ;;  %v251_v35 = vrot.slane %v3697_v24, %v250_v34  ;;  %p3532_p10 = scmp.ne.s32.totalorder %s2877_s30, %s3531_s7  ;;  %p3537_p12 = scmp.lt.s32.totalorder %s3531_s7, %s3531_s7 }
  0x3e   :  { %3322 = vmatpush3.bf16.msra.mxu1 %v3321_v12 }
  0x3f   :  { %3316 = vmatpush3.bf16.msra.mxu0 %v3315_v13  ;;  %3088 = vmatprep.subr.mxu1 %v3566_v1  ;;  %p3538_p13 = por %p3537_p12, %p3536_p11 }
  0x40   :  { %3323 = vmatprep.subr.bf16.mxu0 %v3564_v0 }
  0x41   :  { %3075 = vmatmul.mubr.msk.f32.vlgmr.msra.gmra.mrb[0].mxu1 %vm100_vm1, %v3671_v14  ;;  %p3539_p0 = pnand %p3538_p13, %p3532_p10 }
  0x42   :  { %3064 = vmatmul.mubr.msk.f32.vlgmr.msra.gmra.mrb[0].mxu0 %vm100_vm1, %v3671_v14  ;;  %3090 = vmatprep.mubr.msk.f32.mxu1 %vm3565_vm0, %v3566_v1 }
  0x43   :  { %3085 = vmatprep.mubr.msk.f32.mxu0 %vm3565_vm0, %v3566_v1  ;;  %3325 = vmatpush3.bf16.msra.mxu0 %v3324_v18 }
  0x44   :  { %3326 = vmatprep.subr.bf16.mxu0 %v3564_v0 }
  0x47   :  { %3328 = vmatpush3.bf16.msra.mxu0 %v3327_v20 }
  0x48   :  { %3098 = vmatprep.subr.mxu0 %v3566_v1 }
  0x4a   :  { %3086 = vmatmul.mubr.msk.f32.vlgmr.msra.gmra.mrb[2].mxu0 %vm100_vm1, %v3671_v14 }
  0x4b   :  { %3100 = vmatprep.mubr.msk.f32.mxu0 %vm3565_vm0, %v3566_v1 }
 0x114   :  { %v244_v28 = vpop.f32.mrb[0].mxu1 }
 0x115   :  { %v245_v29 = vadd.f32 %v244_v28, %v177_v26  ;;  %v3076_v30 = vpop.f32.mrb[1].mxu1  ;;  %v170_v31 = vpop.f32.mrb[0].mxu0 }
 0x116   :  { %v3065_v32 = vpop.f32.mrb[1].mxu0  ;;  %v171_v33 = vadd.f32 %v170_v31, %v99_v27 }
 0x117   :  { %660 = vrot.lane.b32.xlu1 %v245_v29, %s3567_s12  ;;  %487 = vrot.lane.b32.xlu0 %v245_v29, %s3568_s13 }
 0x118   :  { %3089 = vmatpush3.xpose.msk.msra.mxu1 %vm322_vm2, %v245_v29 }
 0x119   :  { %3093 = vmatprep.subr.mxu1 %v3566_v1 }
 0x11b   :  { %3091 = vmatmul.mubr.msk.f32.vlgmr.msra.gmra.mrb[2].mxu1 %vm322_vm2, %v171_v33  ;;  %658 = vrot.lane.b32.xlu1 %v171_v33, %s3567_s12 }
 0x11c   :  { %485 = vrot.lane.b32.xlu0 %v171_v33, %s3568_s13  ;;  %3095 = vmatprep.mubr.msk.f32.mxu1 %vm3565_vm0, %v3566_v1 }
 0x11d   :  { %v318_v36 = vpop.f32.mrb[2].mxu0 }
 0x11e   :  { %v3721_v37 = vadd.f32 %v318_v36, %v251_v35  ;;  %v3087_v38 = vpop.f32.mrb[3].mxu0 }
 0x11f   :  { %830 = vrot.lane.b32.xlu1 %v171_v33, %s3569_s14 }
 0x120   :  { %832 = vrot.lane.b32.xlu0 %v245_v29, %s3569_s14  ;;  %3094 = vmatpush3.msra.mxu1 %v3721_v37 }
 0x121   :  { %3103 = vmatprep.subr.mxu1 %v3566_v1 }
 0x189   :  { %v488_v39 = vpop.permute.xlu0 %487  ;;  %v661_v40 = vpop.permute.xlu1 %660 }
 0x18a   :  { %3099 = vmatpush3.xpose.msk.msra.mxu0 %vm322_vm2, %v488_v39 }
 0x18b   :  { %3108 = vmatprep.subr.mxu0 %v3566_v1 }
 0x18d   :  { %v659_v42 = vpop.permute.xlu1 %658 }
 0x18e   :  { %v486_v41 = vpop.permute.xlu0 %485 }
 0x18f   :  { %3101 = vmatmul.mubr.msk.f32.vlgmr.msra.gmra.mrb[4].mxu0 %vm322_vm2, %v486_v41 }
 0x190   :  { %3109 = vmatpush3.xpose.msk.msra.mxu0 %vm322_vm2, %v661_v40  ;;  %3110 = vmatprep.mubr.msk.f32.mxu0 %vm3565_vm0, %v3566_v1 }
 0x191   :  { %3118 = vmatprep.subr.mxu0 %v3566_v1  ;;  %v831_v44 = vpop.permute.xlu1 %830 }
 0x192   :  { %v833_v43 = vpop.permute.xlu0 %832 }
 0x193   :  { %3111 = vmatmul.mubr.msk.f32.vlgmr.msra.gmra.mrb[6].mxu0 %vm322_vm2, %v659_v42  ;;  %v81_v42 = vld [vmem:[#allocation3 + $0x60] sm:$0xff] }
 0x194   :  { %3119 = vmatpush3.xpose.msk.msra.mxu0 %vm322_vm2, %v833_v43  ;;  %3120 = vmatprep.mubr.msk.f32.mxu0 %vm3565_vm0, %v3566_v1  ;;  %v82_v43 = vld [vmem:[#allocation3 + $0x68] sm:$0xff] }
 0x195   :  { %3329 = vmatprep.subr.bf16.mxu0 %v3564_v0 }
 0x197   :  { %3121 = vmatmul.mubr.msk.f32.vlgmr.msra.gmra.mrb[8].mxu0 %vm322_vm2, %v831_v44  ;;  %v3330_v44 = vpack.c.bf16 %v82_v43, %v81_v42  ;;  %v1185_v43 = vsub.s32 7, %v3689_v22 }
 0x198   :  { %3136 = vmatprep.mubr.msk.f32.mxu0 %vm3565_vm0, %v3566_v1 }
 0x199   :  { %3331 = vmatpush3.bf16.msra.mxu0 %v3330_v44  ;;  %v1186_v44 = vrot.slane %v3697_v24, %v1185_v43 }
 0x19a   :  { %3332 = vmatprep.subr.bf16.mxu0 %v3564_v0 }
 0x1ee   :  { %v395_v45 = vpop.f32.mrb[2].mxu1 }
 0x1ef   :  { %v399_v46 = vmul.f32 0.35355338, %v395_v45  ;;  %v3092_v47 = vpop.f32.mrb[3].mxu1  ;;  %v83_v45 = vld [vmem:[#allocation3 + $0x70] sm:$0xff] }
 0x1f1   :  { %v400_v48 = vsel %vm322_vm2, %v399_v46, -inf }
 0x1f2   :  { %401 = vmax.xlane.f32.xlu0 %v400_v48 }
 0x262   :  { %v559_v49 = vpop.f32.mrb[4].mxu0 }
 0x263   :  { %v563_v50 = vmul.f32 0.35355338, %v559_v49  ;;  %v3102_v51 = vpop.f32.mrb[5].mxu0 }
 0x265   :  { %v564_v52 = vsel %vm322_vm2, %v563_v50, -inf }
 0x266   :  { %565 = vmax.xlane.f32.xlu1 %v564_v52  ;;  %v732_v53 = vpop.f32.mrb[6].mxu0 }
 0x267   :  { %v736_v54 = vmul.f32 0.35355338, %v732_v53  ;;  %v3112_v55 = vpop.f32.mrb[7].mxu0 }
 0x269   :  { %v737_v56 = vsel %vm322_vm2, %v736_v54, -inf }
 0x26a   :  { %738 = vmax.xlane.f32.xlu0 %v737_v56  ;;  %v904_v57 = vpop.f32.mrb[8].mxu0 }
 0x26b   :  { %v908_v58 = vmul.f32 0.35355338, %v904_v57  ;;  %v3122_v59 = vpop.f32.mrb[9].mxu0 }
 0x26d   :  { %v909_v60 = vsel %vm322_vm2, %v908_v58, -inf }
 0x26e   :  { %910 = vmax.xlane.f32.xlu0 %v909_v60 }
 0x277   :  { %576 = vrot.lane.b32.xlu1 %v3721_v37, %s3568_s13 }
 0x27f   :  { %v402_v61 = vpop.xlane.xlu0 %401 }
 0x280   :  { %v403_v62 = vsub.f32 %v399_v46, %v402_v61  ;;  %v84_v46 = vld [vmem:[#allocation3 + $0x78] sm:$0xff] }
 0x281   :  { %v3333_v47 = vpack.c.bf16 %v84_v46, %v83_v45 }
 0x282   :  { %v404_v63 = vmul.f32 1.442695, %v403_v62 }
 0x283   :  { %3334 = vmatpush3.bf16.msra.mxu0 %v3333_v47 }
 0x284   :  { %3425 = vpow2.f32 %v404_v63  ;;  %3341 = vmatprep.subr.bf16.mxu0 %v3564_v0 }
 0x28e   :  { %v3426_v2 = vpop.eup %3425 }
 0x28f   :  { %v406_v3 = vsel %vm322_vm2, %v3426_v2, 0.0 }
 0x29b   :  { %407 = vadd.xlane.f32.xlu1 %v406_v3 }
 0x2f3   :  { %v566_v4 = vpop.xlane.xlu1 %565 }
 0x2f4   :  { %v567_v5 = vsub.f32 %v563_v50, %v566_v4 }
 0x2f6   :  { %v568_v6 = vmul.f32 1.442695, %v567_v5 }
 0x2f7   :  { %v739_v7 = vpop.xlane.xlu0 %738  ;;  %v577_v20 = vpop.permute.xlu1 %576 }
 0x2f8   :  { %3427 = vpow2.f32 %v568_v6  ;;  %v740_v8 = vsub.f32 %v736_v54, %v739_v7 }
 0x2fa   :  { %v741_v9 = vmul.f32 1.442695, %v740_v8  ;;  %v85_v8 = vld [vmem:[#allocation6] sm:$0xff] }
 0x2fb   :  { %v911_v10 = vpop.xlane.xlu0 %910 }
 0x2fc   :  { %3429 = vpow2.f32 %v741_v9  ;;  %v912_v11 = vsub.f32 %v908_v58, %v911_v10  ;;  %v1005_v58 = vsub.s32 3, %v3689_v22  ;;  %v86_v9 = vld [vmem:[#allocation6 + $0x8] sm:$0xff] }
 0x2fd   :  { %v3336_v10 = vpack.c.bf16 %v86_v9, %v85_v8  ;;  %v95_v8 = vld [vmem:[%s4015_s3 + $0x8] sm:$0x3] }
 0x2fe   :  { %v913_v12 = vmul.f32 1.442695, %v912_v11  ;;  %v1006_v59 = vrot.slane %v3697_v24, %v1005_v58  ;;  %v87_v11 = vld [vmem:[#allocation6 + $0x10] sm:$0xff]  ;;  %v1290_v9 = vrot.slane %v95_v8, %v3700_v25 }
 0x300   :  { %3431 = vpow2.f32 %v913_v12  ;;  %v88_v12 = vld [vmem:[#allocation6 + $0x18] sm:$0xff] }
 0x302   :  { %v3428_v13 = vpop.eup %3427 }
 0x303   :  { %v570_v15 = vsel %vm322_vm2, %v3428_v13, 0.0 }
 0x304   :  { %571 = vadd.xlane.f32.xlu0 %v570_v15  ;;  %v91_v15 = vld [vmem:[#allocation6 + $0x28] sm:$0xff] }
 0x306   :  { %v3430_v16 = vpop.eup %3429 }
 0x307   :  { %v743_v17 = vsel %vm322_vm2, %v3430_v16, 0.0 }
 0x308   :  { %744 = vadd.xlane.f32.xlu1 %v743_v17 }
 0x30a   :  { %v3432_v18 = vpop.eup %3431 }
 0x30b   :  { %v915_v19 = vsel %vm322_vm2, %v3432_v18, 0.0 }
 0x30c   :  { %916 = vadd.xlane.f32.xlu0 %v915_v19  ;;  %v93_v19 = vld [vmem:[#allocation6 + $0x38] sm:$0xff] }
 0x319   :  { %920 = vrot.lane.b32.xlu1 %v3721_v37, %s3569_s14 }
 0x322   :  { %748 = vrot.lane.b32.xlu0 %v3721_v37, %s3567_s12 }
 0x328   :  { %v408_v21 = vpop.xlane.xlu1 %407 }
 0x329   :  { %3433 = vrcp.f32 %v408_v21 }
 0x333   :  { %v3434_v26 = vpop.eup %3433 }
 0x334   :  { %v410_v27 = vmul.f32 %v3434_v26, %v3426_v2 }
 0x336   :  { %3096 = vmatmul.mubr.msk.f32.vlgmr.msra.gmra.mrb[4].mxu1 %vm322_vm2, %v410_v27 }
 0x337   :  { %3104 = vmatpush3.msra.mxu1 %v577_v20  ;;  %3105 = vmatprep.mubr.msk.f32.mxu1 %vm3565_vm0, %v3566_v1 }
 0x338   :  { %3113 = vmatprep.subr.mxu1 %v3566_v1 }
 0x391   :  { %v572_v28 = vpop.xlane.xlu0 %571 }
 0x392   :  { %3435 = vrcp.f32 %v572_v28  ;;  %v1097_v28 = vsub.s32 4, %v3689_v22 }
 0x395   :  { %v745_v29 = vpop.xlane.xlu1 %744 }
 0x396   :  { %3437 = vrcp.f32 %v745_v29  ;;  %v1102_v29 = vsub.s32 5, %v3689_v22 }
 0x399   :  { %v917_v30 = vpop.xlane.xlu0 %916  ;;  %v921_v37 = vpop.permute.xlu1 %920 }
 0x39a   :  { %3439 = vrcp.f32 %v917_v30  ;;  %v1098_v30 = vrot.slane %v3697_v24, %v1097_v28 }
 0x39c   :  { %v3436_v31 = vpop.eup %3435 }
 0x39d   :  { %v574_v32 = vmul.f32 %v3436_v31, %v3428_v13  ;;  %v749_v33 = vpop.permute.xlu0 %748  ;;  %v3339_v13 = vpack.c.bf16 %v88_v12, %v87_v11  ;;  %v1295_v12 = vrot.slane %v95_v8, %v3692_v23 }
 0x39f   :  { %3106 = vmatmul.mubr.msk.f32.vlgmr.msra.gmra.mrb[6].mxu1 %vm322_vm2, %v574_v32 }
 0x3a0   :  { %v3438_v35 = vpop.eup %3437  ;;  %3114 = vmatpush3.msra.mxu1 %v749_v33  ;;  %3115 = vmatprep.mubr.msk.f32.mxu1 %vm3565_vm0, %v3566_v1  ;;  %v1103_v33 = vrot.slane %v3697_v24, %v1102_v29 }
 0x3a1   :  { %v747_v36 = vmul.f32 %v3438_v35, %v3430_v16  ;;  %3123 = vmatprep.subr.mxu1 %v3566_v1 }
 0x3a3   :  { %3116 = vmatmul.mubr.msk.f32.vlgmr.msra.gmra.mrb[8].mxu1 %vm322_vm2, %v747_v36 }
 0x3a4   :  { %v3440_v38 = vpop.eup %3439  ;;  %3124 = vmatpush3.msra.mxu1 %v921_v37  ;;  %3125 = vmatprep.mubr.msk.f32.mxu1 %vm3565_vm0, %v3566_v1  ;;  %v1107_v37 = vsub.s32 6, %v3689_v22  ;;  %v2526_v22 = vld [vmem:[#allocation8 + $0x10] sm:$0xff] }
 0x3a5   :  { %v919_v39 = vmul.f32 %v3440_v38, %v3432_v18  ;;  %3335 = vmatprep.subr.bf16.mxu1 %v3564_v0  ;;  %v92_v18 = vld [vmem:[#allocation6 + $0x30] sm:$0xff] }
 0x3a6   :  { %v3346_v20 = vpack.c.bf16 %v93_v19, %v92_v18  ;;  %v1108_v38 = vrot.slane %v3697_v24, %v1107_v37  ;;  %v1305_v19 = vld [vmem:[#allocation3 + $0xb0] sm:$0xff] }
 0x3a7   :  { %3126 = vmatmul.mubr.msk.f32.vlgmr.msra.gmra.mrb[10].mxu1 %vm322_vm2, %v919_v39 }
 0x3a8   :  { %3147 = vmatprep.mubr.msk.f32.mxu1 %vm3565_vm0, %v3566_v1  ;;  %3337 = vmatpush3.bf16.msra.mxu1 %v3336_v10 }
 0x3a9   :  { %3338 = vmatprep.subr.bf16.mxu1 %v3564_v0 }
 0x3ac   :  { %3340 = vmatpush3.bf16.msra.mxu1 %v3339_v13  ;;  %v1303_v13 = vld [vmem:[#allocation3 + $0xa0] sm:$0xff] }
 0x3ad   :  { %3349 = vmatprep.subr.bf16.mxu1 %v3564_v0 }
 0x409   :  { %v480_v40 = vpop.f32.mrb[4].mxu1 }
 0x40a   :  { %484 = vst.msk [vmem:[#allocation2] sm:$0xff] %vm322_vm2, %v480_v40  ;;  %v3097_v41 = vpop.f32.mrb[5].mxu1 }
 0x472   :  { %v648_v48 = vpop.f32.mrb[6].mxu1 }
 0x473   :  { %653 = vrot.lane.b32.xlu1 %v648_v48, %s3562_s10  ;;  %v3107_v49 = vpop.f32.mrb[7].mxu1 }
 0x476   :  { %v820_v50 = vpop.f32.mrb[8].mxu1 }
 0x477   :  { %825 = vrot.lane.b32.xlu0 %v820_v50, %s3570_s15  ;;  %v3117_v51 = vpop.f32.mrb[9].mxu1 }
 0x47a   :  { %v992_v52 = vpop.f32.mrb[10].mxu1 }
 0x47b   :  { %997 = vrot.lane.b32.xlu1 %v992_v52, %s3571_s16  ;;  %v3127_v53 = vpop.f32.mrb[11].mxu1 }
 0x4e5   :  { %v654_v54 = vpop.permute.xlu1 %653 }
 0x4e6   :  { %657 = vst.msk [vmem:[#allocation2] sm:$0xff] %vm656_vm3, %v654_v54 }
 0x4e9   :  { %v826_v55 = vpop.permute.xlu0 %825 }
 0x4ea   :  { %829 = vst.msk [vmem:[#allocation2] sm:$0xff] %vm828_vm4, %v826_v55  ;;  %v1298_v55 = vld [vmem:[#allocation3 + $0x80] sm:$0xff] }
 0x4ed   :  { %v998_v56 = vpop.permute.xlu1 %997 }
 0x4ee   :  { %1001 = vst.msk [vmem:[#allocation2] sm:$0xff] %vm1000_vm5, %v998_v56  ;;  %v1299_v56 = vld [vmem:[#allocation3 + $0x88] sm:$0xff] }
 0x4f5   :  { %v1002_v57 = vld [vmem:[#allocation2] sm:$0xff] }
 0x4f6   :  { %3137 = vmatmul.mubr.msk.f32.vlgmr.msra.gmra.mrb[10].mxu0 %vm100_vm1, %v1002_v57  ;;  %v3350_v57 = vpack.c.bf16 %v1299_v56, %v1298_v55 }
 0x4f7   :  { %3158 = vmatprep.mubr.msk.f32.mxu0 %vm3565_vm0, %v3566_v1 }
 0x5c9   :  { %v1076_v60 = vpop.f32.mrb[10].mxu0 }
 0x5ca   :  { %v1077_v61 = vadd.f32 %v1076_v60, %v1006_v59  ;;  %v3138_v62 = vpop.f32.mrb[11].mxu0  ;;  %v1308_v59 = vld [vmem:[#allocation3 + $0xc0] sm:$0xff]  ;;  %v1309_v60 = vld [vmem:[#allocation3 + $0xc8] sm:$0xff] }
 0x5cb   :  { %v3362_v24 = vpack.c.bf16 %v1309_v60, %v1308_v59  ;;  %v1301_v62 = vld [vmem:[#allocation3 + $0x98] sm:$0xff] }
 0x5cc   :  { %v1080_v63 = vadd.f32 %v1077_v61, %v3671_v14  ;;  %v90_v14 = vld [vmem:[#allocation6 + $0x20] sm:$0xff]  ;;  %v1300_v61 = vld [vmem:[#allocation3 + $0x90] sm:$0xff] }
 0x5cd   :  { %v3342_v16 = vpack.c.bf16 %v91_v15, %v90_v14  ;;  %v1304_v14 = vld [vmem:[#allocation3 + $0xa8] sm:$0xff] }
 0x5ce   :  { %v1081_v2 = vsel %vm100_vm1, %v1080_v63, 0.0 }
 0x5cf   :  { %1082 = vadd.xlane.f32.xlu0 %v1081_v2  ;;  %3344 = vmatpush3.bf16.xpose.msk.msra.mxu0 %vm3792_vm7, %v3342_v16  ;;  %v3353_v2 = vpack.c.bf16 %v1301_v62, %v1300_v61  ;;  %v3356_v16 = vpack.c.bf16 %v1304_v14, %v1303_v13 }
 0x5d0   :  { %3345 = vmatprep.subr.bf16.mxu0 %v3564_v0 }
 0x5d7   :  { %3348 = vmatpush3.bf16.xpose.msk.msra.mxu0 %vm3792_vm7, %v3346_v20  ;;  %v1306_v20 = vld [vmem:[#allocation3 + $0xb8] sm:$0xff] }
 0x5d8   :  { %3361 = vmatprep.subr.bf16.mxu0 %v3564_v0 }
 0x65c   :  { %v1083_v3 = vpop.xlane.xlu0 %1082 }
 0x65d   :  { %v1085_v4 = vmul.f32 0.03125, %v1083_v3  ;;  %v1311_v3 = vld [vmem:[#allocation3 + $0xd8] sm:$0xff] }
 0x65f   :  { %v1086_v5 = vsub.f32 %v1080_v63, %v1085_v4  ;;  %v1310_v63 = vld [vmem:[#allocation3 + $0xd0] sm:$0xff] }
 0x660   :  { %v3365_v4 = vpack.c.bf16 %v1311_v3, %v1310_v63 }
 0x661   :  { %v1087_v6 = vmul.f32 %v1086_v5, %v1086_v5 }
 0x663   :  { %v1088_v7 = vsel %vm100_vm1, %v1087_v6, 0.0 }
 0x664   :  { %1089 = vadd.xlane.f32.xlu1 %v1088_v7 }
 0x6f1   :  { %v1090_v21 = vpop.xlane.xlu1 %1089 }
 0x6f2   :  { %v1091_v26 = vmul.f32 0.03125, %v1090_v21  ;;  %v3359_v21 = vpack.c.bf16 %v1306_v20, %v1305_v19 }
 0x6f4   :  { %v1092_v27 = vadd.f32 1e-05, %v1091_v26  ;;  %v3854_v26 = vld [vmem:[%s4015_s3 + $0x10] sm:$0xff] }
 0x6f5   :  { %v2336_v17 = vrot.slane %v3854_v26, %v1107_v37 }
 0x6f6   :  { %3441 = vrsqrt.f32 %v1092_v27  ;;  %v1333_v27 = vrot.slane %v3854_v26, %v3700_v25 }
 0x700   :  { %v3442_v31 = vpop.eup %3441 }
 0x701   :  { %v1094_v32 = vmul.f32 %v3442_v31, %v1086_v5 }
 0x703   :  { %v1099_v35 = vmul.f32 %v1098_v30, %v1094_v32 }
 0x705   :  { %v1104_v36 = vadd.f32 %v1103_v33, %v1099_v35 }
 0x707   :  { %3148 = vmatmul.mubr.msk.f32.vlgmr.msra.gmra.mrb[12].mxu1 %vm100_vm1, %v1104_v36 }
 0x708   :  { %3169 = vmatprep.mubr.msk.f32.mxu1 %vm3565_vm0, %v3566_v1  ;;  %3351 = vmatpush3.bf16.msra.mxu1 %v3350_v57 }
 0x709   :  { %3352 = vmatprep.subr.bf16.mxu1 %v3564_v0 }
 0x70c   :  { %3354 = vmatpush3.bf16.msra.mxu1 %v3353_v2 }
 0x70d   :  { %3355 = vmatprep.subr.bf16.mxu1 %v3564_v0 }
 0x7da   :  { %v1178_v39 = vpop.f32.mrb[12].mxu1 }
 0x7db   :  { %v1179_v40 = vadd.f32 %v1178_v39, %v1108_v38  ;;  %v3149_v41 = vpop.f32.mrb[13].mxu1 }
 0x7dc   :  { %v1484_v41 = vrot.slane %v3854_v26, %v250_v34 }
 0x7dd   :  { %v1182_v42 = vmax.f32 %v1179_v40, 0.0 }
 0x7df   :  { %3159 = vmatmul.mubr.msk.f32.vlgmr.msra.gmra.mrb[12].mxu0 %vm1187_vm6, %v1182_v42 }
 0x7e0   :  { %3191 = vmatprep.mubr.msk.f32.mxu0 %vm3565_vm0, %v3566_v1  ;;  %3363 = vmatpush3.bf16.msra.mxu0 %v3362_v24 }
 0x7e1   :  { %3364 = vmatprep.subr.bf16.mxu0 %v3564_v0 }
 0x7e4   :  { %3366 = vmatpush3.bf16.msra.mxu0 %v3365_v4 }
 0x7e5   :  { %3204 = vmatprep.subr.mxu0 %v3566_v1 }
 0x8b2   :  { %v1269_v45 = vpop.f32.mrb[12].mxu0 }
 0x8b3   :  { %v1270_v46 = vadd.f32 %v1269_v45, %v1186_v44  ;;  %v3160_v47 = vpop.f32.mrb[13].mxu0 }
 0x8b5   :  { %v1273_v48 = vadd.f32 %v1270_v46, %v1104_v36  ;;  %v1410_v36 = vrot.slane %v3854_v26, %v3692_v23 }
 0x8b7   :  { %v1274_v49 = vsel %vm100_vm1, %v1273_v48, 0.0 }
 0x8b8   :  { %1275 = vadd.xlane.f32.xlu0 %v1274_v49 }
 0x945   :  { %v1276_v50 = vpop.xlane.xlu0 %1275 }
 0x946   :  { %v1277_v51 = vmul.f32 0.03125, %v1276_v50 }
 0x948   :  { %v1278_v52 = vsub.f32 %v1273_v48, %v1277_v51 }
 0x94a   :  { %v1279_v53 = vmul.f32 %v1278_v52, %v1278_v52 }
 0x94c   :  { %v1280_v54 = vsel %vm100_vm1, %v1279_v53, 0.0 }
 0x94d   :  { %1281 = vadd.xlane.f32.xlu0 %v1280_v54 }
 0x9da   :  { %v1282_v5 = vpop.xlane.xlu0 %1281 }
 0x9db   :  { %v1283_v6 = vmul.f32 0.03125, %v1282_v5 }
 0x9dd   :  { %v1284_v7 = vadd.f32 1e-05, %v1283_v6 }
 0x9df   :  { %3443 = vrsqrt.f32 %v1284_v7 }
 0x9e9   :  { %v3444_v10 = vpop.eup %3443 }
 0x9ea   :  { %v1286_v11 = vmul.f32 %v3444_v10, %v1278_v52 }
 0x9ec   :  { %v1291_v15 = vmul.f32 %v1290_v9, %v1286_v11 }
 0x9ee   :  { %v3835_v18 = vadd.f32 %v1295_v12, %v1291_v15 }
 0x9f0   :  { %3170 = vmatmul.mubr.msk.f32.vlgmr.msra.gmra.mrb[14].mxu1 %vm100_vm1, %v3835_v18  ;;  %3192 = vmatmul.mubr.msk.f32.vlgmr.msra.gmra.mrb[14].mxu0 %vm100_vm1, %v3835_v18 }
 0x9f1   :  { %3357 = vmatpush3.bf16.msra.mxu1 %v3356_v16  ;;  %3180 = vmatprep.mubr.msk.f32.mxu1 %vm3565_vm0, %v3566_v1 }
 0x9f2   :  { %3358 = vmatprep.subr.bf16.mxu1 %v3564_v0  ;;  %3206 = vmatprep.mubr.msk.f32.mxu0 %vm3565_vm0, %v3566_v1 }
 0x9f5   :  { %3360 = vmatpush3.bf16.msra.mxu1 %v3359_v21 }
 0x9f6   :  { %3194 = vmatprep.subr.mxu1 %v3566_v1 }
 0x9f8   :  { %3181 = vmatmul.mubr.msk.f32.vlgmr.msra.gmra.mrb[16].mxu1 %vm100_vm1, %v3835_v18 }
 0x9f9   :  { %3196 = vmatprep.mubr.msk.f32.mxu1 %vm3565_vm0, %v3566_v1 }
 0xac3   :  { %v1403_v30 = vpop.f32.mrb[14].mxu1  ;;  %v1551_v31 = vpop.f32.mrb[14].mxu0 }
 0xac4   :  { %v1404_v32 = vadd.f32 %v1403_v30, %v1333_v27  ;;  %v3171_v33 = vpop.f32.mrb[15].mxu1  ;;  %v3193_v35 = vpop.f32.mrb[15].mxu0  ;;  %v3868_v42 = vadd.f32 %v1551_v31, %v1484_v41 }
 0xac6   :  { %1717 = vrot.lane.b32.xlu0 %v1404_v32, %s3568_s13 }
 0xacb   :  { %v1477_v38 = vpop.f32.mrb[16].mxu1 }
 0xacc   :  { %v1478_v39 = vadd.f32 %v1477_v38, %v1410_v36  ;;  %v3182_v40 = vpop.f32.mrb[17].mxu1 }
 0xace   :  { %2062 = vrot.lane.b32.xlu0 %v1478_v39, %s3569_s14  ;;  %1719 = vrot.lane.b32.xlu1 %v1478_v39, %s3568_s13 }
 0xacf   :  { %3195 = vmatpush3.xpose.msk.msra.mxu1 %vm322_vm2, %v1478_v39 }
 0xad0   :  { %3199 = vmatprep.subr.mxu1 %v3566_v1 }
 0xad2   :  { %3197 = vmatmul.mubr.msk.f32.vlgmr.msra.gmra.mrb[18].mxu1 %vm322_vm2, %v1404_v32  ;;  %1891 = vrot.lane.b32.xlu1 %v1478_v39, %s3567_s12 }
 0xad3   :  { %3200 = vmatpush3.msra.mxu1 %v3868_v42  ;;  %3201 = vmatprep.mubr.msk.f32.mxu1 %vm3565_vm0, %v3566_v1 }
 0xad4   :  { %3209 = vmatprep.subr.mxu1 %v3566_v1 }
 0xad6   :  { %1889 = vrot.lane.b32.xlu1 %v1404_v32, %s3567_s12 }
 0xada   :  { %2060 = vrot.lane.b32.xlu1 %v1404_v32, %s3569_s14 }
 0xb38   :  { %v1718_v44 = vpop.permute.xlu0 %1717 }
 0xb40   :  { %v1720_v34 = vpop.permute.xlu1 %1719  ;;  %v2063_v47 = vpop.permute.xlu0 %2062 }
 0xb41   :  { %3205 = vmatpush3.xpose.msk.msra.mxu0 %vm322_vm2, %v1720_v34 }
 0xb42   :  { %3214 = vmatprep.subr.mxu0 %v3566_v1 }
 0xb44   :  { %3207 = vmatmul.mubr.msk.f32.vlgmr.msra.gmra.mrb[16].mxu0 %vm322_vm2, %v1718_v44  ;;  %v1892_v45 = vpop.permute.xlu1 %1891 }
 0xb45   :  { %3215 = vmatpush3.xpose.msk.msra.mxu0 %vm322_vm2, %v1892_v45  ;;  %3216 = vmatprep.mubr.msk.f32.mxu0 %vm3565_vm0, %v3566_v1 }
 0xb46   :  { %3224 = vmatprep.subr.mxu0 %v3566_v1 }
 0xb48   :  { %v1890_v46 = vpop.permute.xlu1 %1889 }
 0xb49   :  { %3217 = vmatmul.mubr.msk.f32.vlgmr.msra.gmra.mrb[18].mxu0 %vm322_vm2, %v1890_v46 }
 0xb4a   :  { %3225 = vmatpush3.xpose.msk.msra.mxu0 %vm322_vm2, %v2063_v47  ;;  %3226 = vmatprep.mubr.msk.f32.mxu0 %vm3565_vm0, %v3566_v1 }
 0xb4b   :  { %3367 = vmatprep.subr.bf16.mxu0 %v3564_v0 }
 0xb4c   :  { %v2061_v48 = vpop.permute.xlu1 %2060 }
 0xb4d   :  { %3227 = vmatmul.mubr.msk.f32.vlgmr.msra.gmra.mrb[20].mxu0 %vm322_vm2, %v2061_v48 }
 0xb4e   :  { %3242 = vmatprep.mubr.msk.f32.mxu0 %vm3565_vm0, %v3566_v1 }
 0xba5   :  { %v1627_v49 = vpop.f32.mrb[18].mxu1 }
 0xba6   :  { %v1631_v50 = vmul.f32 0.35355338, %v1627_v49  ;;  %v3198_v51 = vpop.f32.mrb[19].mxu1 }
 0xba7   :  { %v1313_v51 = vld [vmem:[#allocation3 + $0xe0] sm:$0xff] }
 0xba8   :  { %v1632_v52 = vsel %vm322_vm2, %v1631_v50, -inf }
 0xba9   :  { %1633 = vmax.xlane.f32.xlu0 %v1632_v52  ;;  %v1314_v52 = vld [vmem:[#allocation3 + $0xe8] sm:$0xff] }
 0xc17   :  { %v1791_v53 = vpop.f32.mrb[16].mxu0 }
 0xc18   :  { %v1795_v54 = vmul.f32 0.35355338, %v1791_v53  ;;  %v3208_v55 = vpop.f32.mrb[17].mxu0  ;;  %v3368_v53 = vpack.c.bf16 %v1314_v52, %v1313_v51 }
 0xc19   :  { %v1316_v55 = vld [vmem:[#allocation3 + $0xf8] sm:$0xff] }
 0xc1a   :  { %v1796_v56 = vsel %vm322_vm2, %v1795_v54, -inf  ;;  %3369 = vmatpush3.bf16.msra.mxu0 %v3368_v53 }
 0xc1b   :  { %1797 = vmax.xlane.f32.xlu1 %v1796_v56  ;;  %3370 = vmatprep.subr.bf16.mxu0 %v3564_v0 }
 0xc1c   :  { %v1963_v57 = vpop.f32.mrb[18].mxu0 }
 0xc1d   :  { %v1967_v59 = vmul.f32 0.35355338, %v1963_v57  ;;  %v3218_v60 = vpop.f32.mrb[19].mxu0 }
 0xc1f   :  { %v1968_v24 = vsel %vm322_vm2, %v1967_v59, -inf }
 0xc20   :  { %1969 = vmax.xlane.f32.xlu0 %v1968_v24  ;;  %v2134_v61 = vpop.f32.mrb[20].mxu0 }
 0xc21   :  { %v2138_v62 = vmul.f32 0.35355338, %v2134_v61  ;;  %v3228_v63 = vpop.f32.mrb[21].mxu0 }
 0xc23   :  { %v2139_v2 = vsel %vm322_vm2, %v2138_v62, -inf }
 0xc24   :  { %2140 = vmax.xlane.f32.xlu0 %v2139_v2 }
 0xc2c   :  { %1808 = vrot.lane.b32.xlu1 %v3868_v42, %s3568_s13 }
 0xc36   :  { %v1634_v3 = vpop.xlane.xlu0 %1633 }
 0xc37   :  { %v1635_v4 = vsub.f32 %v1631_v50, %v1634_v3 }
 0xc39   :  { %v1636_v5 = vmul.f32 1.442695, %v1635_v4 }
 0xc3b   :  { %3445 = vpow2.f32 %v1636_v5  ;;  %v2235_v5 = vrot.slane %v3854_v26, %v1005_v58  ;;  %v1320_v58 = vld [vmem:[#allocation6 + $0x50] sm:$0xff] }
 0xc45   :  { %v3446_v6 = vpop.eup %3445 }
 0xc46   :  { %v1638_v7 = vsel %vm322_vm2, %v3446_v6, 0.0 }
 0xc50   :  { %1639 = vadd.xlane.f32.xlu1 %v1638_v7 }
 0xca8   :  { %v1798_v8 = vpop.xlane.xlu1 %1797 }
 0xca9   :  { %v1799_v9 = vsub.f32 %v1795_v54, %v1798_v8  ;;  %v1315_v54 = vld [vmem:[#allocation3 + $0xf0] sm:$0xff] }
 0xcaa   :  { %v3371_v56 = vpack.c.bf16 %v1316_v55, %v1315_v54 }
 0xcab   :  { %v1800_v10 = vmul.f32 1.442695, %v1799_v9 }
 0xcac   :  { %v1809_v32 = vpop.permute.xlu1 %1808  ;;  %3372 = vmatpush3.bf16.msra.mxu0 %v3371_v56 }
 0xcad   :  { %3447 = vpow2.f32 %v1800_v10  ;;  %v1970_v11 = vpop.xlane.xlu0 %1969  ;;  %3379 = vmatprep.subr.bf16.mxu0 %v3564_v0 }
 0xcae   :  { %v1971_v12 = vsub.f32 %v1967_v59, %v1970_v11 }
 0xcb0   :  { %v1972_v13 = vmul.f32 1.442695, %v1971_v12 }
 0xcb1   :  { %v2141_v14 = vpop.xlane.xlu0 %2140 }
 0xcb2   :  { %3449 = vpow2.f32 %v1972_v13  ;;  %v2142_v15 = vsub.f32 %v2138_v62, %v2141_v14 }
 0xcb4   :  { %v2143_v16 = vmul.f32 1.442695, %v2142_v15 }
 0xcb6   :  { %3451 = vpow2.f32 %v2143_v16  ;;  %v1318_v16 = vld [vmem:[#allocation6 + $0x40] sm:$0xff] }
 0xcb7   :  { %v3448_v19 = vpop.eup %3447 }
 0xcb8   :  { %v1802_v20 = vsel %vm322_vm2, %v3448_v19, 0.0 }
 0xcb9   :  { %1803 = vadd.xlane.f32.xlu0 %v1802_v20 }
 0xcbc   :  { %v3450_v21 = vpop.eup %3449 }
 0xcbd   :  { %v1974_v27 = vsel %vm322_vm2, %v3450_v21, 0.0 }
 0xcbe   :  { %1975 = vadd.xlane.f32.xlu1 %v1974_v27 }
 0xcc0   :  { %v3452_v30 = vpop.eup %3451 }
 0xcc1   :  { %v2145_v31 = vsel %vm322_vm2, %v3452_v30, 0.0 }
 0xcc2   :  { %2146 = vadd.xlane.f32.xlu0 %v2145_v31 }
 0xccf   :  { %2150 = vrot.lane.b32.xlu1 %v3868_v42, %s3569_s14 }
 0xcd8   :  { %1979 = vrot.lane.b32.xlu0 %v3868_v42, %s3567_s12 }
 0xcdd   :  { %v1640_v33 = vpop.xlane.xlu1 %1639 }
 0xcde   :  { %3453 = vrcp.f32 %v1640_v33  ;;  %v1326_v33 = vld [vmem:[#allocation6 + $0x78] sm:$0xff] }
 0xce8   :  { %v3454_v35 = vpop.eup %3453 }
 0xce9   :  { %v1642_v36 = vmul.f32 %v3454_v35, %v3446_v6 }
 0xceb   :  { %3202 = vmatmul.mubr.msk.f32.vlgmr.msra.gmra.mrb[20].mxu1 %vm322_vm2, %v1642_v36 }
 0xcec   :  { %3210 = vmatpush3.msra.mxu1 %v1809_v32  ;;  %3211 = vmatprep.mubr.msk.f32.mxu1 %vm3565_vm0, %v3566_v1  ;;  %v1325_v32 = vld [vmem:[#allocation6 + $0x70] sm:$0xff] }
 0xced   :  { %3219 = vmatprep.subr.mxu1 %v3566_v1  ;;  %v3384_v35 = vpack.c.bf16 %v1326_v33, %v1325_v32  ;;  %v2785_v32 = vld [vmem:[#allocation8 + $0x68] sm:$0xff] }
 0xd46   :  { %v1804_v38 = vpop.xlane.xlu0 %1803 }
 0xd47   :  { %3455 = vrcp.f32 %v1804_v38 }
 0xd4b   :  { %v1976_v39 = vpop.xlane.xlu1 %1975 }
 0xd4c   :  { %3457 = vrcp.f32 %v1976_v39 }
 0xd4f   :  { %v2147_v40 = vpop.xlane.xlu0 %2146  ;;  %v2151_v46 = vpop.permute.xlu1 %2150 }
 0xd50   :  { %3459 = vrcp.f32 %v2147_v40  ;;  %v2326_v40 = vrot.slane %v3854_v26, %v1097_v28 }
 0xd51   :  { %v3456_v41 = vpop.eup %3455 }
 0xd52   :  { %v1806_v42 = vmul.f32 %v3456_v41, %v3448_v19  ;;  %v1319_v19 = vld [vmem:[#allocation6 + $0x48] sm:$0xff] }
 0xd53   :  { %v1980_v34 = vpop.permute.xlu0 %1979  ;;  %v3374_v20 = vpack.c.bf16 %v1319_v19, %v1318_v16  ;;  %v2932_v16 = vld [vmem:[%s4017_s5] ss:$0 sm:$0xff] }
 0xd54   :  { %3212 = vmatmul.mubr.msk.f32.vlgmr.msra.gmra.mrb[22].mxu1 %vm322_vm2, %v1806_v42 }
 0xd55   :  { %3220 = vmatpush3.msra.mxu1 %v1980_v34  ;;  %3221 = vmatprep.mubr.msk.f32.mxu1 %vm3565_vm0, %v3566_v1  ;;  %v2331_v34 = vrot.slane %v3854_v26, %v1102_v29  ;;  %v2414_v29 = vrot.slane %v3854_v26, %v1185_v43  ;;  %v2527_v43 = vld [vmem:[#allocation8 + $0x18] sm:$0xff] }
 0xd56   :  { %v3458_v44 = vpop.eup %3457  ;;  %3229 = vmatprep.subr.mxu1 %v3566_v1  ;;  %v3391_v26 = vpack.c.bf16 %v2527_v43, %v2526_v22 }
 0xd57   :  { %v1978_v45 = vmul.f32 %v3458_v44, %v3450_v21  ;;  %v1321_v21 = vld [vmem:[#allocation6 + $0x58] sm:$0xff] }
 0xd58   :  { %v3377_v27 = vpack.c.bf16 %v1321_v21, %v1320_v58 }
 0xd59   :  { %3222 = vmatmul.mubr.msk.f32.vlgmr.msra.gmra.mrb[24].mxu1 %vm322_vm2, %v1978_v45 }
 0xd5a   :  { %v3460_v47 = vpop.eup %3459  ;;  %3230 = vmatpush3.msra.mxu1 %v2151_v46  ;;  %3231 = vmatprep.mubr.msk.f32.mxu1 %vm3565_vm0, %v3566_v1 }
 0xd5b   :  { %v2149_v48 = vmul.f32 %v3460_v47, %v3452_v30  ;;  %3373 = vmatprep.subr.bf16.mxu1 %v3564_v0  ;;  %v1324_v30 = vld [vmem:[#allocation6 + $0x68] sm:$0xff] }
 0xd5d   :  { %3232 = vmatmul.mubr.msk.f32.vlgmr.msra.gmra.mrb[26].mxu1 %vm322_vm2, %v2149_v48 }
 0xd5e   :  { %3253 = vmatprep.mubr.msk.f32.mxu1 %vm3565_vm0, %v3566_v1  ;;  %3375 = vmatpush3.bf16.msra.mxu1 %v3374_v20 }
 0xd5f   :  { %3376 = vmatprep.subr.bf16.mxu1 %v3564_v0 }
 0xd62   :  { %3378 = vmatpush3.bf16.msra.mxu1 %v3377_v27  ;;  %v2699_v27 = vld [vmem:[#allocation8 + $0x50] sm:$0xff] }
 0xd63   :  { %3387 = vmatprep.subr.bf16.mxu1 %v3564_v0 }
 0xdbe   :  { %v1712_v49 = vpop.f32.mrb[20].mxu1 }
 0xdbf   :  { %1716 = vst.msk [vmem:[#allocation2] sm:$0xff] %vm322_vm2, %v1712_v49  ;;  %v3203_v50 = vpop.f32.mrb[21].mxu1 }
 0xe27   :  { %v1880_v57 = vpop.f32.mrb[22].mxu1 }
 0xe28   :  { %1885 = vrot.lane.b32.xlu1 %v1880_v57, %s3562_s10  ;;  %v3213_v59 = vpop.f32.mrb[23].mxu1 }
 0xe29   :  { %v2524_v59 = vld [vmem:[#allocation8] sm:$0xff] }
 0xe2c   :  { %v2051_v60 = vpop.f32.mrb[24].mxu1 }
 0xe2d   :  { %2056 = vrot.lane.b32.xlu0 %v2051_v60, %s3570_s15  ;;  %v3223_v24 = vpop.f32.mrb[25].mxu1  ;;  %v2525_v60 = vld [vmem:[#allocation8 + $0x8] sm:$0xff] }
 0xe2e   :  { %v3388_v24 = vpack.c.bf16 %v2525_v60, %v2524_v59 }
 0xe30   :  { %v2222_v61 = vpop.f32.mrb[26].mxu1 }
 0xe31   :  { %2227 = vrot.lane.b32.xlu1 %v2222_v61, %s3571_s16  ;;  %v3233_v62 = vpop.f32.mrb[27].mxu1 }
 0xe9a   :  { %v1886_v63 = vpop.permute.xlu1 %1885 }
 0xe9b   :  { %1888 = vst.msk [vmem:[#allocation2] sm:$0xff] %vm656_vm3, %v1886_v63 }
 0xe9f   :  { %v2057_v2 = vpop.permute.xlu0 %2056 }
 0xea0   :  { %2059 = vst.msk [vmem:[#allocation2] sm:$0xff] %vm828_vm4, %v2057_v2  ;;  %v2909_v2 = vld [vmem:[%s4015_s3 + $0x18] sm:$0x3] }
 0xea3   :  { %v2228_v3 = vpop.permute.xlu1 %2227 }
 0xea4   :  { %2230 = vst.msk [vmem:[#allocation2] sm:$0xff] %vm1000_vm5, %v2228_v3  ;;  %v2517_v3 = vrot.slane %v2909_v2, %v3700_v25 }
 0xeab   :  { %v2231_v4 = vld [vmem:[#allocation2] sm:$0xff] }
 0xeac   :  { %3243 = vmatmul.mubr.msk.f32.vlgmr.msra.gmra.mrb[22].mxu0 %vm100_vm1, %v2231_v4 }
 0xead   :  { %3264 = vmatprep.mubr.msk.f32.mxu0 %vm3565_vm0, %v3566_v1 }
 0xf7f   :  { %v2305_v6 = vpop.f32.mrb[22].mxu0 }
 0xf80   :  { %v2306_v7 = vadd.f32 %v2305_v6, %v2235_v5  ;;  %v3244_v8 = vpop.f32.mrb[23].mxu0  ;;  %v2522_v6 = vrot.slane %v2909_v2, %v3692_v23  ;;  %v2697_v23 = vld [vmem:[#allocation8 + $0x40] sm:$0xff] }
 0xf81   :  { %v2611_v8 = vld [vmem:[#allocation8 + $0x28] sm:$0xff] }
 0xf82   :  { %v2309_v9 = vadd.f32 %v2306_v7, %v3835_v18  ;;  %v1323_v18 = vld [vmem:[#allocation6 + $0x60] sm:$0xff] }
 0xf83   :  { %v3380_v31 = vpack.c.bf16 %v1324_v30, %v1323_v18  ;;  %v2610_v7 = vld [vmem:[#allocation8 + $0x20] sm:$0xff]  ;;  %v2700_v18 = vld [vmem:[#allocation8 + $0x58] sm:$0xff] }
 0xf84   :  { %v2310_v10 = vsel %vm100_vm1, %v2309_v9, 0.0  ;;  %v3403_v30 = vpack.c.bf16 %v2700_v18, %v2699_v27 }
 0xf85   :  { %2311 = vadd.xlane.f32.xlu0 %v2310_v10  ;;  %3382 = vmatpush3.bf16.xpose.msk.msra.mxu0 %vm3792_vm7, %v3380_v31  ;;  %v3394_v10 = vpack.c.bf16 %v2611_v8, %v2610_v7  ;;  %v2784_v31 = vld [vmem:[#allocation8 + $0x60] sm:$0xff] }
 0xf86   :  { %3383 = vmatprep.subr.bf16.mxu0 %v3564_v0  ;;  %v3406_v33 = vpack.c.bf16 %v2785_v32, %v2784_v31 }
 0xf8d   :  { %3386 = vmatpush3.bf16.xpose.msk.msra.mxu0 %vm3792_vm7, %v3384_v35  ;;  %v2935_v35 = vld [vmem:[%s4017_s5 + $0x1] ss:$0 sm:$0xff] }
 0xf8e   :  { %3399 = vmatprep.subr.bf16.mxu0 %v3564_v0 }
0x1012   :  { %v2312_v11 = vpop.xlane.xlu0 %2311 }
0x1013   :  { %v2313_v12 = vmul.f32 0.03125, %v2312_v11 }
0x1015   :  { %v2314_v13 = vsub.f32 %v2309_v9, %v2313_v12  ;;  %v2612_v12 = vld [vmem:[#allocation8 + $0x30] sm:$0xff] }
0x1017   :  { %v2315_v14 = vmul.f32 %v2314_v13, %v2314_v13 }
0x1019   :  { %v2316_v15 = vsel %vm100_vm1, %v2315_v14, 0.0  ;;  %v2698_v14 = vld [vmem:[#allocation8 + $0x48] sm:$0xff] }
0x101a   :  { %2317 = vadd.xlane.f32.xlu1 %v2316_v15  ;;  %v3400_v15 = vpack.c.bf16 %v2698_v14, %v2697_v23 }
0x10a7   :  { %v2318_v36 = vpop.xlane.xlu1 %2317 }
0x10a8   :  { %v2319_v38 = vmul.f32 0.03125, %v2318_v36 }
0x10aa   :  { %v2320_v39 = vadd.f32 1e-05, %v2319_v38 }
0x10ac   :  { %3461 = vrsqrt.f32 %v2320_v39 }
0x10b6   :  { %v3462_v41 = vpop.eup %3461 }
0x10b7   :  { %v2322_v42 = vmul.f32 %v3462_v41, %v2314_v13  ;;  %v2613_v13 = vld [vmem:[#allocation8 + $0x38] sm:$0xff] }
0x10b8   :  { %v3397_v25 = vpack.c.bf16 %v2613_v13, %v2612_v12  ;;  %v2787_v41 = vld [vmem:[#allocation8 + $0x78] sm:$0xff] }
0x10b9   :  { %v2327_v44 = vmul.f32 %v2326_v40, %v2322_v42 }
0x10bb   :  { %v2332_v45 = vadd.f32 %v2331_v34, %v2327_v44  ;;  %v2938_v34 = vld [vmem:[%s4017_s5 + $0x2] ss:$0 sm:$0xff] }
0x10bd   :  { %3254 = vmatmul.mubr.msk.f32.vlgmr.msra.gmra.mrb[28].mxu1 %vm100_vm1, %v2332_v45 }
0x10be   :  { %3275 = vmatprep.mubr.msk.f32.mxu1 %vm3565_vm0, %v3566_v1  ;;  %3389 = vmatpush3.bf16.msra.mxu1 %v3388_v24 }
0x10bf   :  { %3390 = vmatprep.subr.bf16.mxu1 %v3564_v0 }
0x10c2   :  { %3392 = vmatpush3.bf16.msra.mxu1 %v3391_v26 }
0x10c3   :  { %3393 = vmatprep.subr.bf16.mxu1 %v3564_v0 }
0x1190   :  { %v2406_v46 = vpop.f32.mrb[28].mxu1 }
0x1191   :  { %v2407_v47 = vadd.f32 %v2406_v46, %v2336_v17  ;;  %v3255_v28 = vpop.f32.mrb[29].mxu1  ;;  %v2941_v46 = vld [vmem:[%s4017_s5 + $0x3] ss:$0 sm:$0xff] }
0x1193   :  { %v2410_v48 = vmax.f32 %v2407_v47, 0.0 }
0x1195   :  { %3265 = vmatmul.mubr.msk.f32.vlgmr.msra.gmra.mrb[24].mxu0 %vm1187_vm6, %v2410_v48 }
0x1196   :  { %3297 = vmatprep.mubr.msk.f32.mxu0 %vm3565_vm0, %v3566_v1  ;;  %3401 = vmatpush3.bf16.msra.mxu0 %v3400_v15 }
0x1197   :  { %3402 = vmatprep.subr.bf16.mxu0 %v3564_v0 }
0x119a   :  { %3404 = vmatpush3.bf16.msra.mxu0 %v3403_v30 }
0x1268   :  { %v2496_v49 = vpop.f32.mrb[24].mxu0 }
0x1269   :  { %v2497_v50 = vadd.f32 %v2496_v49, %v2414_v29  ;;  %v3266_v51 = vpop.f32.mrb[25].mxu0 }
0x126b   :  { %v2500_v52 = vadd.f32 %v2497_v50, %v2332_v45 }
0x126d   :  { %v2501_v53 = vsel %vm100_vm1, %v2500_v52, 0.0 }
0x126e   :  { %2502 = vadd.xlane.f32.xlu0 %v2501_v53 }
0x12fb   :  { %v2503_v37 = vpop.xlane.xlu0 %2502 }
0x12fc   :  { %v2504_v54 = vmul.f32 0.03125, %v2503_v37 }
0x12fe   :  { %v2505_v55 = vsub.f32 %v2500_v52, %v2504_v54 }
0x1300   :  { %v2506_v56 = vmul.f32 %v2505_v55, %v2505_v55 }
0x1302   :  { %v2507_v57 = vsel %vm100_vm1, %v2506_v56, 0.0 }
0x1303   :  { %2508 = vadd.xlane.f32.xlu0 %v2507_v57 }
0x1390   :  { %v2509_v61 = vpop.xlane.xlu0 %2508 }
0x1391   :  { %v2510_v62 = vmul.f32 0.03125, %v2509_v61 }
0x1393   :  { %v2511_v63 = vadd.f32 1e-05, %v2510_v62 }
0x1395   :  { %3463 = vrsqrt.f32 %v2511_v63 }
0x139f   :  { %v3464_v4 = vpop.eup %3463 }
0x13a0   :  { %v2513_v5 = vmul.f32 %v3464_v4, %v2505_v55 }
0x13a2   :  { %v2518_v9 = vmul.f32 %v2517_v3, %v2513_v5 }
0x13a4   :  { %v2523_v11 = vadd.f32 %v2522_v6, %v2518_v9 }
0x13a6   :  { %3276 = vmatmul.mubr.msk.f32.vlgmr.msra.gmra.mrb[30].mxu1 %vm100_vm1, %v2523_v11 }
0x13a7   :  { %3395 = vmatpush3.bf16.msra.mxu1 %v3394_v10  ;;  %3286 = vmatprep.mubr.msk.f32.mxu1 %vm3565_vm0, %v3566_v1 }
0x13a8   :  { %3396 = vmatprep.subr.bf16.mxu1 %v3564_v0 }
0x13ab   :  { %3398 = vmatpush3.bf16.msra.mxu1 %v3397_v25 }
0x13ac   :  { %3405 = vmatprep.subr.bf16.mxu1 %v3564_v0 }
0x1479   :  { %v2604_v19 = vpop.f32.mrb[30].mxu1 }
0x147a   :  { %v2605_v20 = vadd.f32 %v2932_v16, %v2604_v19  ;;  %v3277_v58 = vpop.f32.mrb[31].mxu1 }
0x147c   :  { %v2608_v21 = vmax.f32 %v2605_v20, 0.0 }
0x147e   :  { %3287 = vmatmul.mubr.msk.f32.vlgmr.msra.gmra.mrb[32].mxu1 %vm100_vm1, %v2608_v21 }
0x147f   :  { %3308 = vmatprep.mubr.msk.f32.mxu1 %vm3565_vm0, %v3566_v1  ;;  %3407 = vmatpush3.bf16.msra.mxu1 %v3406_v33  ;;  %v2786_v1 = vld [vmem:[#allocation8 + $0x70] sm:$0xff] }
0x1480   :  { %3408 = vmatprep.subr.bf16.mxu1 %v3564_v0  ;;  %v3409_v42 = vpack.c.bf16 %v2787_v41, %v2786_v1 }
0x1483   :  { %3410 = vmatpush3.bf16.msra.mxu1 %v3409_v42 }
0x1551   :  { %v2691_v36 = vpop.f32.mrb[32].mxu1 }
0x1552   :  { %v2692_v38 = vadd.f32 %v2935_v35, %v2691_v36  ;;  %v3288_v39 = vpop.f32.mrb[33].mxu1 }
0x1554   :  { %v2695_v40 = vmax.f32 %v2692_v38, 0.0 }
0x1556   :  { %3298 = vmatmul.mubr.msk.f32.vlgmr.msra.gmra.mrb[26].mxu0 %vm100_vm1, %v2695_v40 }
0x1629   :  { %v2778_v44 = vpop.f32.mrb[26].mxu0 }
0x162a   :  { %v2779_v0 = vadd.f32 %v2938_v34, %v2778_v44  ;;  %v3299_v45 = vpop.f32.mrb[27].mxu0 }
0x162c   :  { %v2782_v17 = vmax.f32 %v2779_v0, 0.0 }
0x162e   :  { %3309 = vmatmul.mubr.msk.f32.vlgmr.msra.gmra.mrb[34].mxu1 %vm100_vm1, %v2782_v17 }
0x1701   :  { %v2865_v47 = vpop.f32.mrb[34].mxu1 }
0x1702   :  { %v2866_v28 = vadd.f32 %v2941_v46, %v2865_v47  ;;  %v3310_v48 = vpop.f32.mrb[35].mxu1 }
0x1704   :  { %2869 = vst.msk [vmem:[#allocation9] sm:$0xff] %vm100_vm1, %v2866_v28 }
0x1705   :  { %3542 = shalt.err (!%p3539_p0)
}
0x1706   :  { %s3543_s24 = scalar_lea.hbm %s4018_s6, 128 }
0x1707   :  { %p3544_p1 = scmp.ne.s32.totalorder %s4018_s6, %s3543_s24  ;;  %p3547_p2 = scmp.lt.u32.totalorder %s3543_s24, %s4018_s6 }
0x1709   :  { %p3549_p3 = pnand %p3547_p2, %p3544_p1 }
0x170b   :  { %3552 = shalt.err (!%p3549_p3)
}
0x170c   :  { %2879 = dma.vmem_to_hbm [thread:$0]  %s2877_s30, 128, %s4018_s6, [#allocation5]  }
0x170d   :  { %3557 = dma.done.wait [#allocation5], 128  }
0x170e   :  { %3558 = vsyncadd [#allocation5], 4294967168 }
0x170f   :  { %2883 = vsyncpa [#allocation4], 1 }
0x1710   :  { %2884 = vsyncpa [#allocation7], 1 }
0x1711   :  { %2885 = vsyncpa [#allocation5], 1 }

</bundles_post_ra>
